<compile_context>
chip_gen: v7x
topology: tpu7x:2x2x1
jax: 0.10.0
libtpu: 0.0.40
codegen_flags: <defaults>
</compile_context>

<pallas_src>
import jax
import jax.numpy as jnp
import numpy as np
from jax.experimental import pallas as pl
from jax.experimental.pallas import tpu as pltpu

LN_EPS = 1e-5


def _round_up(x, m):
    return ((x + m - 1) // m) * m


def _temporal_transformer_kernel(
    x_ref,       # [2, TN, E] f32   (slab 0: H_prev, slab 1: H_tilde)
    wqkv_ref,    # [E, 3*QS] bf16   (Q|K|V, each in its own 128-lane-aligned slot)
    bqkv_ref,    # [1, 3*QS] f32
    wo_ref,      # [QS, E]  bf16    (contraction rows zero-padded to QS)
    w1_ref,      # [E, FF]  bf16
    b1_ref,      # [1, FF]  f32
    w2_ref,      # [FF, E]  bf16
    p_ref,       # [6, E]   f32     rows: bo, b2, ln1_g, ln1_b, ln2_g, ln2_b
    out_ref,     # [TN, E]
):
    _, tn, e = x_ref.shape
    qs = wo_ref.shape[0]
    scale = 1.0 / jnp.sqrt(jnp.float32(e))

    # Both tokens as one row slab: [2*TN, E] (free row-major reshape of the block).
    x = x_ref[...].reshape(2 * tn, e)
    x_bf = x.astype(jnp.bfloat16)

    # Fused QKV projection: one lane-dense MXU dispatch, f32 accumulation.
    qkv = jnp.dot(x_bf, wqkv_ref[...], preferred_element_type=jnp.float32) + bqkv_ref[...]
    q = qkv[:, 0 * qs:1 * qs]          # 128-lane tile-aligned slices (free)
    k = qkv[:, 1 * qs:2 * qs]
    v = qkv[:, 2 * qs:3 * qs]

    # Attention over the length-2 sequence.  Row r attends to itself and to its
    # partner row (r +- TN); partner operands come from a sublane roll (XLU slot),
    # so no concatenates / VMEM copies are needed.  Padded lanes are zero, so the
    # 128-lane dot products are exact.
    k_other = pltpu.roll(k, shift=tn, axis=0)
    v_other = pltpu.roll(v, shift=tn, axis=0)
    s_self = jnp.sum(q * k, axis=-1, keepdims=True) * scale
    s_other = jnp.sum(q * k_other, axis=-1, keepdims=True) * scale
    m = jnp.maximum(s_self, s_other)
    p_self = jnp.exp(s_self - m)
    p_other = jnp.exp(s_other - m)
    inv = pl.reciprocal(p_self + p_other, approx=True)
    attn = (p_self * v + p_other * v_other) * inv                  # [2*TN, QS]

    # Output projection + residual, then LayerNorm1 (post-norm).
    x1 = x + jnp.dot(attn.astype(jnp.bfloat16), wo_ref[...],
                     preferred_element_type=jnp.float32) + p_ref[0:1, :]

    def layer_norm(z, g, b):
        mu = jnp.mean(z, axis=-1, keepdims=True)
        zc = z - mu
        var = jnp.mean(zc * zc, axis=-1, keepdims=True)
        return zc * jax.lax.rsqrt(var + LN_EPS) * g + b

    x1 = layer_norm(x1, p_ref[2:3, :], p_ref[3:4, :])

    # Feed-forward (relu), unchunked: one W1 matmul, one W2 matmul.
    h = jnp.dot(x1.astype(jnp.bfloat16), w1_ref[...],
                preferred_element_type=jnp.float32) + b1_ref[...]
    h = jnp.maximum(h, 0.0)
    ffn = jnp.dot(h.astype(jnp.bfloat16), w2_ref[...],
                  preferred_element_type=jnp.float32) + p_ref[1:2, :]

    x2 = layer_norm(x1 + ffn, p_ref[4:5, :], p_ref[5:6, :])

    # Mean over the (length-2) sequence axis.
    out_ref[...] = ((x2[:tn] + x2[tn:]) * 0.5).astype(out_ref.dtype)


def temporal_transformer(h_tilde, h_prev, params, *, row_tile=None):
    """H_tilde, H_prev: [N, E] float32. Returns fused embeddings [N, E]."""
    n, e = h_tilde.shape
    ff = params["w1"].shape[1]
    qs = _round_up(e, 128)        # lane-aligned slot width per Q/K/V projection

    # Row tile: run the whole problem as ONE grid step unless each split tile still
    # gets a large slab (2*TN = 1024 rows fills the 256-tall MXU and keeps the f32
    # FFN hidden at ~8 MiB, comfortably inside every generation's VMEM budget).
    if row_tile is None:
        n8 = _round_up(max(n, 1), 8)
        row_tile = n8 if n8 <= 512 else 512
    tn = row_tile
    n_pad = _round_up(n, tn)
    if n_pad != n:
        pad = ((0, n_pad - n), (0, 0))
        h_tilde = jnp.pad(h_tilde, pad)
        h_prev = jnp.pad(h_prev, pad)

    # One packed activation input: [2, N_pad, E]  (slab 0: prev, slab 1: tilde).
    x_packed = jnp.stack([h_prev, h_tilde], axis=0)

    # Fused Q|K|V weight: each projection zero-padded into its own 128-lane slot;
    # Wo's contraction rows zero-padded to match.  Weights cast to bf16.
    def lane_pad(a):
        return jnp.pad(a, ((0, 0), (0, qs - e)))

    wqkv = jnp.concatenate(
        [lane_pad(params["wq"]), lane_pad(params["wk"]), lane_pad(params["wv"])],
        axis=1).astype(jnp.bfloat16)
    bqkv = jnp.concatenate(
        [lane_pad(params["bq"]), lane_pad(params["bk"]), lane_pad(params["bv"])],
        axis=1)
    wo = jnp.pad(params["wo"], ((0, qs - e), (0, 0))).astype(jnp.bfloat16)
    w1 = params["w1"].astype(jnp.bfloat16)
    w2 = params["w2"].astype(jnp.bfloat16)
    # Six tiny [1, E] parameters packed into one slab (one BlockSpec / one DMA).
    pvec = jnp.concatenate(
        [params["bo"], params["b2"],
         params["ln1_g"], params["ln1_b"],
         params["ln2_g"], params["ln2_b"]], axis=0)

    steps = n_pad // tn

    x_spec = pl.BlockSpec((2, tn, e), lambda i: (0, i, 0))
    out_spec = pl.BlockSpec((tn, e), lambda i: (i, 0))

    def full(shape):
        # Constant-index (resident) blocks: fetched once for a 1-step grid.
        return pl.BlockSpec(shape, lambda i: (0,) * len(shape))

    in_specs = [
        x_spec,                                   # packed H_prev / H_tilde
        full((e, 3 * qs)), full((1, 3 * qs)),     # fused Wqkv, bqkv
        full((qs, e)),                            # Wo (rows padded to QS)
        full((e, ff)), full((1, ff)),             # W1, b1
        full((ff, e)),                            # W2
        full((6, e)),                             # bo, b2, ln1/ln2 gamma+beta
    ]

    m_total = 2 * n_pad
    weight_bytes = 2 * (e * 3 * qs + qs * e + 2 * e * ff)   # bf16 weights
    small_bytes = 4 * (3 * qs + ff + 6 * e)                 # f32 biases / LN params
    cost = pl.CostEstimate(
        flops=2 * m_total * (e * 3 * qs + qs * e + 2 * e * ff),
        transcendentals=10 * n_pad,   # per token pair: 4 exp + 2 recip + 4 rsqrt
        bytes_accessed=4 * 3 * n_pad * e + steps * (weight_bytes + small_bytes),
    )

    # Only mark the row axis parallel when there is more than one (large) tile; for
    # a 1-step grid this avoids any pointless cross-TensorCore weight duplication.
    sem = ("parallel",) if steps > 1 else ("arbitrary",)

    out = pl.pallas_call(
        _temporal_transformer_kernel,
        out_shape=jax.ShapeDtypeStruct((n_pad, e), h_tilde.dtype),
        grid_spec=pltpu.PrefetchScalarGridSpec(
            num_scalar_prefetch=0,
            grid=(steps,),
            in_specs=in_specs,
            out_specs=out_spec,
        ),
        compiler_params=pltpu.CompilerParams(dimension_semantics=sem),
        cost_estimate=cost,
    )(x_packed, wqkv, bqkv, wo, w1, params["b1"], w2, pvec)
    return out[:n] if n_pad != n else out


def _reference(h_tilde, h_prev, p):
    """Plain-JAX f32 reference of the same forward pass (for a correctness check)."""
    def ln(x, g, b):
        mu = jnp.mean(x, -1, keepdims=True)
        var = jnp.mean((x - mu) ** 2, -1, keepdims=True)
        return (x - mu) / jnp.sqrt(var + LN_EPS) * g + b

    x = jnp.stack([h_prev, h_tilde], axis=1)                       # [N, 2, E]
    e = x.shape[-1]
    q = x @ p["wq"] + p["bq"]
    k = x @ p["wk"] + p["bk"]
    v = x @ p["wv"] + p["bv"]
    s = jnp.einsum("nqe,nke->nqk", q, k) / jnp.sqrt(jnp.float32(e))
    a = jax.nn.softmax(s, axis=-1)
    attn = jnp.einsum("nqk,nke->nqe", a, v) @ p["wo"] + p["bo"]
    x = ln(x + attn, p["ln1_g"], p["ln1_b"])
    h = jnp.maximum(x @ p["w1"] + p["b1"], 0.0)
    x = ln(x + h @ p["w2"] + p["b2"], p["ln2_g"], p["ln2_b"])
    return x.mean(axis=1)


def init_params(key, embed_dim, ff_dim):
    ks = jax.random.split(key, 8)
    s = 0.05
    return {
        "wq": s * jax.random.normal(ks[0], (embed_dim, embed_dim), jnp.float32),
        "wk": s * jax.random.normal(ks[1], (embed_dim, embed_dim), jnp.float32),
        "wv": s * jax.random.normal(ks[2], (embed_dim, embed_dim), jnp.float32),
        "wo": s * jax.random.normal(ks[3], (embed_dim, embed_dim), jnp.float32),
        "bq": s * jax.random.normal(ks[4], (1, embed_dim), jnp.float32),
        "bk": jnp.zeros((1, embed_dim), jnp.float32),
        "bv": s * jax.random.normal(ks[5], (1, embed_dim), jnp.float32),
        "bo": jnp.zeros((1, embed_dim), jnp.float32),
        "w1": s * jax.random.normal(ks[6], (embed_dim, ff_dim), jnp.float32),
        "b1": jnp.zeros((1, ff_dim), jnp.float32),
        "w2": s * jax.random.normal(ks[7], (ff_dim, embed_dim), jnp.float32),
        "b2": jnp.zeros((1, embed_dim), jnp.float32),
        "ln1_g": jnp.ones((1, embed_dim), jnp.float32),
        "ln1_b": jnp.zeros((1, embed_dim), jnp.float32),
        "ln2_g": jnp.ones((1, embed_dim), jnp.float32),
        "ln2_b": jnp.zeros((1, embed_dim), jnp.float32),
    }


if __name__ == "__main__":
    N, EMBED_DIM, FF_DIM = 16, 32, 2048   # FF_DIM = PyTorch default dim_feedforward

    key = jax.random.PRNGKey(0)
    k_t, k_p, k_w = jax.random.split(key, 3)
    h_tilde = jax.random.normal(k_t, (N, EMBED_DIM), jnp.float32)
    h_prev = jax.random.normal(k_p, (N, EMBED_DIM), jnp.float32)
    params = init_params(k_w, EMBED_DIM, FF_DIM)

    out = temporal_transformer(h_tilde, h_prev, params)   # single grid step at N=16
    out = jax.block_until_ready(out)

    ref = jax.block_until_ready(_reference(h_tilde, h_prev, params))
    # bf16 matmul operands (f32 accumulation) + approx reciprocal -> relaxed tolerance.
    np.testing.assert_allclose(np.asarray(out), np.asarray(ref), rtol=2e-2, atol=2e-2)

    print("KERNEL_OK")
</pallas_src>

<mosaic_0001>
module attributes {stable_mosaic.version = 11 : i64} {
  func.func @_temporal_transformer_kernel(%arg0: i32, %arg1: memref<2x16x32xf32, #tpu.memory_space<vmem>>, %arg2: memref<32x384xbf16, #tpu.memory_space<vmem>>, %arg3: memref<1x384xf32, #tpu.memory_space<vmem>>, %arg4: memref<128x32xbf16, #tpu.memory_space<vmem>>, %arg5: memref<32x2048xbf16, #tpu.memory_space<vmem>>, %arg6: memref<1x2048xf32, #tpu.memory_space<vmem>>, %arg7: memref<2048x32xbf16, #tpu.memory_space<vmem>>, %arg8: memref<6x32xf32, #tpu.memory_space<vmem>>, %arg9: memref<16x32xf32, #tpu.memory_space<vmem>>) attributes {dimension_semantics = [#tpu.dimension_semantics<arbitrary>], iteration_bounds = array<i64: 1>, scalar_prefetch = 0 : i64, scratch_operands = 0 : i64, tpu.core_type = #tpu.core_type<tc>, window_params = [{transform_indices = @transform_0, window_bounds = array<i64: 2, 16, 32>}, {pipeline_mode = #tpu.pipeline_mode<synchronous>, transform_indices = @transform_1, window_bounds = array<i64: 32, 384>}, {pipeline_mode = #tpu.pipeline_mode<synchronous>, transform_indices = @transform_2, window_bounds = array<i64: 1, 384>}, {pipeline_mode = #tpu.pipeline_mode<synchronous>, transform_indices = @transform_3, window_bounds = array<i64: 128, 32>}, {pipeline_mode = #tpu.pipeline_mode<synchronous>, transform_indices = @transform_4, window_bounds = array<i64: 32, 2048>}, {pipeline_mode = #tpu.pipeline_mode<synchronous>, transform_indices = @transform_5, window_bounds = array<i64: 1, 2048>}, {pipeline_mode = #tpu.pipeline_mode<synchronous>, transform_indices = @transform_6, window_bounds = array<i64: 2048, 32>}, {pipeline_mode = #tpu.pipeline_mode<synchronous>, transform_indices = @transform_7, window_bounds = array<i64: 6, 32>}, {transform_indices = @transform_8, window_bounds = array<i64: 16, 32>}]} {
    %cst = arith.constant 3.200000e+01 : f32
    %0 = math.sqrt %cst : f32
    %cst_0 = arith.constant 1.000000e+00 : f32
    %1 = arith.divf %cst_0, %0 : f32
    %c0 = arith.constant 0 : index
    %c0_1 = arith.constant 0 : index
    %c0_2 = arith.constant 0 : index
    %2 = vector.load %arg1[%c0, %c0_1, %c0_2] : memref<2x16x32xf32, #tpu.memory_space<vmem>>, vector<2x16x32xf32>
    %3 = vector.shape_cast %2 : vector<2x16x32xf32> to vector<32x32xf32>
    %4 = arith.truncf %3 : vector<32x32xf32> to vector<32x32xbf16>
    %c0_3 = arith.constant 0 : index
    %c0_4 = arith.constant 0 : index
    %5 = vector.load %arg2[%c0_3, %c0_4] : memref<32x384xbf16, #tpu.memory_space<vmem>>, vector<32x384xbf16>
    %cst_5 = arith.constant dense<0.000000e+00> : vector<32x384xf32>
    %6 = tpu.matmul %4, %5, %cst_5 {dimension_numbers = #tpu.dot_dimension_numbers<[1], [0], [0], [1], [0, 0, 1, 1], [], []>} : vector<32x32xbf16>, vector<32x384xbf16>, vector<32x384xf32> -> vector<32x384xf32>
    %c0_6 = arith.constant 0 : index
    %c0_7 = arith.constant 0 : index
    %7 = vector.load %arg3[%c0_6, %c0_7] : memref<1x384xf32, #tpu.memory_space<vmem>>, vector<1x384xf32>
    %8 = vector.broadcast %7 : vector<1x384xf32> to vector<32x384xf32>
    %9 = arith.addf %6, %8 : vector<32x384xf32>
    %10 = vector.extract_strided_slice %9 {offsets = [0, 0], sizes = [32, 128], strides = [1, 1]} : vector<32x384xf32> to vector<32x128xf32>
    %11 = vector.extract_strided_slice %9 {offsets = [0, 128], sizes = [32, 128], strides = [1, 1]} : vector<32x384xf32> to vector<32x128xf32>
    %12 = vector.extract_strided_slice %9 {offsets = [0, 256], sizes = [32, 128], strides = [1, 1]} : vector<32x384xf32> to vector<32x128xf32>
    %c16_i32 = arith.constant 16 : i32
    %13 = tpu.dynamic_rotate %11 by %c16_i32 dim 0 : vector<32x128xf32>, i32 -> vector<32x128xf32>
    %c16_i32_8 = arith.constant 16 : i32
    %14 = tpu.dynamic_rotate %12 by %c16_i32_8 dim 0 : vector<32x128xf32>, i32 -> vector<32x128xf32>
    %15 = arith.mulf %10, %11 : vector<32x128xf32>
    %cst_9 = arith.constant dense<0.000000e+00> : vector<32xf32>
    %16 = vector.multi_reduction <add>, %15, %cst_9 [1] : vector<32x128xf32> to vector<32xf32>
    %17 = vector.shape_cast %16 : vector<32xf32> to vector<32x1xf32>
    %18 = vector.broadcast %1 : f32 to vector<32x1xf32>
    %19 = arith.mulf %17, %18 : vector<32x1xf32>
    %20 = arith.mulf %10, %13 : vector<32x128xf32>
    %cst_10 = arith.constant dense<0.000000e+00> : vector<32xf32>
    %21 = vector.multi_reduction <add>, %20, %cst_10 [1] : vector<32x128xf32> to vector<32xf32>
    %22 = vector.shape_cast %21 : vector<32xf32> to vector<32x1xf32>
    %23 = vector.broadcast %1 : f32 to vector<32x1xf32>
    %24 = arith.mulf %22, %23 : vector<32x1xf32>
    %25 = arith.maximumf %19, %24 : vector<32x1xf32>
    %26 = arith.subf %19, %25 : vector<32x1xf32>
    %27 = math.exp %26 : vector<32x1xf32>
    %28 = arith.subf %24, %25 : vector<32x1xf32>
    %29 = math.exp %28 : vector<32x1xf32>
    %30 = arith.addf %27, %29 : vector<32x1xf32>
    %31 = tpu.reciprocal %30 {approx = true} : vector<32x1xf32> -> vector<32x1xf32>
    %32 = vector.broadcast %27 : vector<32x1xf32> to vector<32x128xf32>
    %33 = arith.mulf %32, %12 : vector<32x128xf32>
    %34 = vector.broadcast %29 : vector<32x1xf32> to vector<32x128xf32>
    %35 = arith.mulf %34, %14 : vector<32x128xf32>
    %36 = arith.addf %33, %35 : vector<32x128xf32>
    %37 = vector.broadcast %31 : vector<32x1xf32> to vector<32x128xf32>
    %38 = arith.mulf %36, %37 : vector<32x128xf32>
    %39 = arith.truncf %38 : vector<32x128xf32> to vector<32x128xbf16>
    %c0_11 = arith.constant 0 : index
    %c0_12 = arith.constant 0 : index
    %40 = vector.load %arg4[%c0_11, %c0_12] : memref<128x32xbf16, #tpu.memory_space<vmem>>, vector<128x32xbf16>
    %cst_13 = arith.constant dense<0.000000e+00> : vector<32x32xf32>
    %41 = tpu.matmul %39, %40, %cst_13 {dimension_numbers = #tpu.dot_dimension_numbers<[1], [0], [0], [1], [0, 0, 1, 1], [], []>} : vector<32x128xbf16>, vector<128x32xbf16>, vector<32x32xf32> -> vector<32x32xf32>
    %42 = arith.addf %3, %41 : vector<32x32xf32>
    %c0_14 = arith.constant 0 : index
    %c0_15 = arith.constant 0 : index
    %43 = vector.load %arg8[%c0_14, %c0_15] : memref<6x32xf32, #tpu.memory_space<vmem>>, vector<1x32xf32>
    %44 = vector.broadcast %43 : vector<1x32xf32> to vector<32x32xf32>
    %45 = arith.addf %42, %44 : vector<32x32xf32>
    %c2 = arith.constant 2 : index
    %c0_16 = arith.constant 0 : index
    %46 = vector.load %arg8[%c2, %c0_16] : memref<6x32xf32, #tpu.memory_space<vmem>>, vector<1x32xf32>
    %c3 = arith.constant 3 : index
    %c0_17 = arith.constant 0 : index
    %47 = vector.load %arg8[%c3, %c0_17] : memref<6x32xf32, #tpu.memory_space<vmem>>, vector<1x32xf32>
    %cst_18 = arith.constant dense<0.000000e+00> : vector<32xf32>
    %48 = vector.multi_reduction <add>, %45, %cst_18 [1] : vector<32x32xf32> to vector<32xf32>
    %49 = vector.shape_cast %48 : vector<32xf32> to vector<32x1xf32>
    %cst_19 = arith.constant 3.200000e+01 : f32
    %50 = vector.broadcast %cst_19 : f32 to vector<32x1xf32>
    %51 = arith.divf %49, %50 : vector<32x1xf32>
    %52 = vector.broadcast %51 : vector<32x1xf32> to vector<32x32xf32>
    %53 = arith.subf %45, %52 : vector<32x32xf32>
    %54 = arith.mulf %53, %53 : vector<32x32xf32>
    %cst_20 = arith.constant dense<0.000000e+00> : vector<32xf32>
    %55 = vector.multi_reduction <add>, %54, %cst_20 [1] : vector<32x32xf32> to vector<32xf32>
    %56 = vector.shape_cast %55 : vector<32xf32> to vector<32x1xf32>
    %cst_21 = arith.constant 3.200000e+01 : f32
    %57 = vector.broadcast %cst_21 : f32 to vector<32x1xf32>
    %58 = arith.divf %56, %57 : vector<32x1xf32>
    %cst_22 = arith.constant 9.99999974E-6 : f32
    %59 = vector.broadcast %cst_22 : f32 to vector<32x1xf32>
    %60 = arith.addf %58, %59 : vector<32x1xf32>
    %61 = math.rsqrt %60 : vector<32x1xf32>
    %62 = vector.broadcast %61 : vector<32x1xf32> to vector<32x32xf32>
    %63 = arith.mulf %53, %62 : vector<32x32xf32>
    %64 = vector.broadcast %46 : vector<1x32xf32> to vector<32x32xf32>
    %65 = arith.mulf %63, %64 : vector<32x32xf32>
    %66 = vector.broadcast %47 : vector<1x32xf32> to vector<32x32xf32>
    %67 = arith.addf %65, %66 : vector<32x32xf32>
    %68 = arith.truncf %67 : vector<32x32xf32> to vector<32x32xbf16>
    %c0_23 = arith.constant 0 : index
    %c0_24 = arith.constant 0 : index
    %69 = vector.load %arg5[%c0_23, %c0_24] : memref<32x2048xbf16, #tpu.memory_space<vmem>>, vector<32x2048xbf16>
    %cst_25 = arith.constant dense<0.000000e+00> : vector<32x2048xf32>
    %70 = tpu.matmul %68, %69, %cst_25 {dimension_numbers = #tpu.dot_dimension_numbers<[1], [0], [0], [1], [0, 0, 1, 1], [], []>} : vector<32x32xbf16>, vector<32x2048xbf16>, vector<32x2048xf32> -> vector<32x2048xf32>
    %c0_26 = arith.constant 0 : index
    %c0_27 = arith.constant 0 : index
    %71 = vector.load %arg6[%c0_26, %c0_27] : memref<1x2048xf32, #tpu.memory_space<vmem>>, vector<1x2048xf32>
    %72 = vector.broadcast %71 : vector<1x2048xf32> to vector<32x2048xf32>
    %73 = arith.addf %70, %72 : vector<32x2048xf32>
    %cst_28 = arith.constant 0.000000e+00 : f32
    %74 = vector.broadcast %cst_28 : f32 to vector<32x2048xf32>
    %75 = arith.maximumf %73, %74 : vector<32x2048xf32>
    %76 = arith.truncf %75 : vector<32x2048xf32> to vector<32x2048xbf16>
    %c0_29 = arith.constant 0 : index
    %c0_30 = arith.constant 0 : index
    %77 = vector.load %arg7[%c0_29, %c0_30] : memref<2048x32xbf16, #tpu.memory_space<vmem>>, vector<2048x32xbf16>
    %cst_31 = arith.constant dense<0.000000e+00> : vector<32x32xf32>
    %78 = tpu.matmul %76, %77, %cst_31 {dimension_numbers = #tpu.dot_dimension_numbers<[1], [0], [0], [1], [0, 0, 1, 1], [], []>} : vector<32x2048xbf16>, vector<2048x32xbf16>, vector<32x32xf32> -> vector<32x32xf32>
    %c1 = arith.constant 1 : index
    %c0_32 = arith.constant 0 : index
    %79 = vector.load %arg8[%c1, %c0_32] : memref<6x32xf32, #tpu.memory_space<vmem>>, vector<1x32xf32>
    %80 = vector.broadcast %79 : vector<1x32xf32> to vector<32x32xf32>
    %81 = arith.addf %78, %80 : vector<32x32xf32>
    %82 = arith.addf %67, %81 : vector<32x32xf32>
    %c4 = arith.constant 4 : index
    %c0_33 = arith.constant 0 : index
    %83 = vector.load %arg8[%c4, %c0_33] : memref<6x32xf32, #tpu.memory_space<vmem>>, vector<1x32xf32>
    %c5 = arith.constant 5 : index
    %c0_34 = arith.constant 0 : index
    %84 = vector.load %arg8[%c5, %c0_34] : memref<6x32xf32, #tpu.memory_space<vmem>>, vector<1x32xf32>
    %cst_35 = arith.constant dense<0.000000e+00> : vector<32xf32>
    %85 = vector.multi_reduction <add>, %82, %cst_35 [1] : vector<32x32xf32> to vector<32xf32>
    %86 = vector.shape_cast %85 : vector<32xf32> to vector<32x1xf32>
    %cst_36 = arith.constant 3.200000e+01 : f32
    %87 = vector.broadcast %cst_36 : f32 to vector<32x1xf32>
    %88 = arith.divf %86, %87 : vector<32x1xf32>
    %89 = vector.broadcast %88 : vector<32x1xf32> to vector<32x32xf32>
    %90 = arith.subf %82, %89 : vector<32x32xf32>
    %91 = arith.mulf %90, %90 : vector<32x32xf32>
    %cst_37 = arith.constant dense<0.000000e+00> : vector<32xf32>
    %92 = vector.multi_reduction <add>, %91, %cst_37 [1] : vector<32x32xf32> to vector<32xf32>
    %93 = vector.shape_cast %92 : vector<32xf32> to vector<32x1xf32>
    %cst_38 = arith.constant 3.200000e+01 : f32
    %94 = vector.broadcast %cst_38 : f32 to vector<32x1xf32>
    %95 = arith.divf %93, %94 : vector<32x1xf32>
    %cst_39 = arith.constant 9.99999974E-6 : f32
    %96 = vector.broadcast %cst_39 : f32 to vector<32x1xf32>
    %97 = arith.addf %95, %96 : vector<32x1xf32>
    %98 = math.rsqrt %97 : vector<32x1xf32>
    %99 = vector.broadcast %98 : vector<32x1xf32> to vector<32x32xf32>
    %100 = arith.mulf %90, %99 : vector<32x32xf32>
    %101 = vector.broadcast %83 : vector<1x32xf32> to vector<32x32xf32>
    %102 = arith.mulf %100, %101 : vector<32x32xf32>
    %103 = vector.broadcast %84 : vector<1x32xf32> to vector<32x32xf32>
    %104 = arith.addf %102, %103 : vector<32x32xf32>
    %105 = vector.extract_strided_slice %104 {offsets = [0, 0], sizes = [16, 32], strides = [1, 1]} : vector<32x32xf32> to vector<16x32xf32>
    %106 = vector.extract_strided_slice %104 {offsets = [16, 0], sizes = [16, 32], strides = [1, 1]} : vector<32x32xf32> to vector<16x32xf32>
    %107 = arith.addf %105, %106 : vector<16x32xf32>
    %cst_40 = arith.constant 5.000000e-01 : f32
    %108 = vector.broadcast %cst_40 : f32 to vector<16x32xf32>
    %109 = arith.mulf %107, %108 : vector<16x32xf32>
    %c0_41 = arith.constant 0 : index
    %c0_42 = arith.constant 0 : index
    %110 = vector.load %arg9[%c0_41, %c0_42] : memref<16x32xf32, #tpu.memory_space<vmem>>, vector<16x32xf32>
    tpu.vector_store %arg9[%c0_41, %c0_42], %109 {strides = array<i32>} : memref<16x32xf32, #tpu.memory_space<vmem>>, vector<16x32xf32>,
    return
  }
  func.func @transform_0(%arg0: i32) -> (i32, i32, i32) {
    %c0_i32 = arith.constant 0 : i32
    %c0_i32_0 = arith.constant 0 : i32
    %c0_i32_1 = arith.constant 0 : i32
    return %c0_i32, %arg0, %c0_i32_0 : i32, i32, i32
  }
  func.func @transform_1(%arg0: i32) -> (i32, i32) {
    %c0_i32 = arith.constant 0 : i32
    %c0_i32_0 = arith.constant 0 : i32
    %c0_i32_1 = arith.constant 0 : i32
    return %c0_i32, %c0_i32_0 : i32, i32
  }
  func.func @transform_2(%arg0: i32) -> (i32, i32) {
    %c0_i32 = arith.constant 0 : i32
    %c0_i32_0 = arith.constant 0 : i32
    %c0_i32_1 = arith.constant 0 : i32
    return %c0_i32, %c0_i32_0 : i32, i32
  }
  func.func @transform_3(%arg0: i32) -> (i32, i32) {
    %c0_i32 = arith.constant 0 : i32
    %c0_i32_0 = arith.constant 0 : i32
    %c0_i32_1 = arith.constant 0 : i32
    return %c0_i32, %c0_i32_0 : i32, i32
  }
  func.func @transform_4(%arg0: i32) -> (i32, i32) {
    %c0_i32 = arith.constant 0 : i32
    %c0_i32_0 = arith.constant 0 : i32
    %c0_i32_1 = arith.constant 0 : i32
    return %c0_i32, %c0_i32_0 : i32, i32
  }
  func.func @transform_5(%arg0: i32) -> (i32, i32) {
    %c0_i32 = arith.constant 0 : i32
    %c0_i32_0 = arith.constant 0 : i32
    %c0_i32_1 = arith.constant 0 : i32
    return %c0_i32, %c0_i32_0 : i32, i32
  }
  func.func @transform_6(%arg0: i32) -> (i32, i32) {
    %c0_i32 = arith.constant 0 : i32
    %c0_i32_0 = arith.constant 0 : i32
    %c0_i32_1 = arith.constant 0 : i32
    return %c0_i32, %c0_i32_0 : i32, i32
  }
  func.func @transform_7(%arg0: i32) -> (i32, i32) {
    %c0_i32 = arith.constant 0 : i32
    %c0_i32_0 = arith.constant 0 : i32
    %c0_i32_1 = arith.constant 0 : i32
    return %c0_i32, %c0_i32_0 : i32, i32
  }
  func.func @transform_8(%arg0: i32) -> (i32, i32) {
    %c0_i32 = arith.constant 0 : i32
    %c0_i32_0 = arith.constant 0 : i32
    return %arg0, %c0_i32 : i32, i32
  }
}

</mosaic_0001>

<bundles_post_ra>
// kernel: tpu_custom_call.1
= control target key start
LH: loop header
LB: loop body
LE: loop exit
PB: predicated region body
PF: predicated region fallthrough
CT: control target
= control target key end

     0   :  { %v3485_v2 = vmov 0   ;;  %vm94_vm0 = vcmask 261120   ;;  %s4446_s0 = inlined_call_operand.vmem [shape: f32[2,16,32], index: 0, kind: input, shape index: {}]   ;;  %s4447_s1 = inlined_call_operand.vmem [shape: bf16[32,384], index: 1, kind: input, shape index: {}]   ;;  %s4448_s2 = inlined_call_operand.vmem [shape: f32[1,384], index: 2, kind: input, shape index: {}]   ;;  %s4449_s3 = inlined_call_operand.vmem [shape: bf16[128,32], index: 3, kind: input, shape index: {}]   ;;  %s4450_s4 = inlined_call_operand.vmem [shape: bf16[32,2048], index: 4, kind: input, shape index: {}]   ;;  %s4451_s5 = inlined_call_operand.vmem [shape: f32[1,2048], index: 5, kind: input, shape index: {}]   ;;  %s4452_s6 = inlined_call_operand.vmem [shape: bf16[2048,32], index: 6, kind: input, shape index: {}]   ;;  %s4453_s7 = inlined_call_operand.vmem [shape: f32[6,32], index: 7, kind: input, shape index: {}]   ;;  %s4454_s8 = inlined_call_operand.hbm [shape: f32[16,32], index: 8, kind: output, shape index: {}]  }
   0x1   :  { %v3277_v0 = vld [vmem:[%s4447_s1 + $0x4] ss:$12 sps:$4 sm:$0xff]   ;;  %v3279_v1 = vld [vmem:[%s4447_s1] ss:$12 sps:$4 sm:$0xff]   ;;  %133 = vmatprep.mubr.bf16.mxu0 %v3485_v2  ;;  %v3280_v3 = vld [vmem:[%s4447_s1 + $0x1c] ss:$12 sps:$4 sm:$0xff]  }
   0x2   :  { %101 = vmatprep.subr.bf16.mxu0 %v3277_v0  ;;  %v3547_v4 = vld [vmem:[%s4446_s0] sm:$0xff]  ;;  %v3555_v6 = vld [vmem:[%s4446_s0 + $0x8] sm:$0xff]  ;;  %v3569_v10 = vld [vmem:[%s4446_s0 + $0x10] sm:$0xff] }
   0x3   :  { %102 = vmatpush1.bf16.msra.mxu0 %v3279_v1  ;;  %v3282_v5 = vld [vmem:[%s4447_s1 + $0x18] ss:$12 sps:$4 sm:$0xff]   ;;  %v35_v7 = vpack.c.bf16 %v3555_v6, %v3547_v4  ;;  %v3283_v8 = vld [vmem:[%s4447_s1 + $0x8] ss:$12 sps:$4 sm:$0xff]   ;;  %v3284_v9 = vld [vmem:[%s4447_s1 + $0x20] ss:$12 sps:$4 sm:$0xff]  }
   0x4   :  { %103 = vmatprep.subr.bf16.mxu0 %v3280_v3  ;;  %3245 = vmatprep.subr.bf16.mxu1 %v3283_v8  ;;  %v3574_v11 = vld [vmem:[%s4446_s0 + $0x18] sm:$0xff] }
   0x5   :  { %3249 = vmatprep.mubr.msk.bf16.mxu1 %vm94_vm0, %v35_v7  ;;  %3246 = vmatpush3.bf16.msra.mxu1 %v3283_v8  ;;  %v36_v12 = vpack.c.bf16 %v3574_v11, %v3569_v10 }
   0x6   :  { %3247 = vmatprep.subr.bf16.mxu1 %v3284_v9 }
   0x7   :  { %104 = vmatpush1.bf16.msra.mxu0 %v3282_v5 }
   0x9   :  { %3248 = vmatpush3.bf16.msra.mxu1 %v3284_v9 }
   0xa   :  { %2813 = vmatmul.mubr.msk.bf16.vlgmr.msra.gmra.mrb[0].mxu0 %vm94_vm0, %v35_v7 }
   0xb   :  { %143 = vmatprep.mubr.bf16.mxu0 %v3485_v2 }
   0xc   :  { %3250 = vmatmul.mubr.msk.bf16.vlgmr.msra.gmra.mrb[0].mxu1 %vm94_vm0, %v36_v12 }
   0xd   :  { %802 = vmatprep.mubr.bf16.mxu1 %v3485_v2 }
  0x12   :  { %2814 = vmatmul.mubr.msk.bf16.gmra.mrb[4].mxu0 %vm94_vm0, %v36_v12 }
  0x13   :  { %13 = vsyncpa [#allocation3], 0  ;;  %v47_v13 = vlaneseq  ;;  %v3591_v16 = vld [vmem:[%s4448_s2] sm:$0x7]  ;;  %v3286_v47 = vld [vmem:[%s4449_s3 + $0x8] sm:$0xff]   ;;  %s3486_s24 = smov [#allocation2]  }
  0x14   :  { %v3285_v44 = vld [vmem:[%s4449_s3] sm:$0xff]   ;;  %v3287_v50 = vld [vmem:[%s4449_s3 + $0x10] sm:$0xff]   ;;  %v3288_v51 = vld [vmem:[%s4449_s3 + $0x18] sm:$0xff]   ;;  %s2796_s0 = sshll.u32 %s3486_s24, 4  ;;  %s2797_s0 = int_to_ptr.vmem [resolvable:$true] %s2796_s0 }
  0x15   :  { %v3583_v14 = vshrl.u32 %v47_v13, 7  ;;  %3253 = vmatprep.subr.bf16.mxu0 %v3285_v44  ;;  %v3289_v52 = vld [vmem:[%s4449_s3 + $0x20] sm:$0xff]   ;;  %v3290_v53 = vld [vmem:[%s4449_s3 + $0x28] sm:$0xff]   ;;  %v3291_v54 = vld [vmem:[%s4449_s3 + $0x30] sm:$0xff]   ;;  %p3466_p1 = scmp.lt.s32.totalorder %s2797_s0, %s2797_s0 }
  0x16   :  { %3254 = vmatpush3.bf16.msra.mxu0 %v3285_v44  ;;  %v3292_v55 = vld [vmem:[%s4449_s3 + $0x38] sm:$0xff]  }
  0x17   :  { %v3586_v15 = vsub.s32 0, %v3583_v14  ;;  %v3594_v17 = vsub.s32 1, %v3583_v14  ;;  %3255 = vmatprep.subr.bf16.mxu0 %v3286_v47 }
  0x19   :  { %v50_v18 = vrot.slane %v3591_v16, %v3586_v15  ;;  %v54_v19 = vrot.slane %v3591_v16, %v3594_v17 }
  0x1a   :  { %3256 = vmatpush3.bf16.msra.mxu0 %v3286_v47 }
  0x1b   :  { %3257 = vmatprep.subr.bf16.mxu0 %v3287_v50 }
  0x1e   :  { %3258 = vmatpush3.bf16.msra.mxu0 %v3287_v50 }
  0x1f   :  { %3259 = vmatprep.subr.bf16.mxu0 %v3288_v51 }
  0x22   :  { %3260 = vmatpush3.bf16.msra.mxu0 %v3288_v51 }
  0x23   :  { %3261 = vmatprep.subr.bf16.mxu0 %v3289_v52 }
  0x26   :  { %3262 = vmatpush3.bf16.msra.mxu0 %v3289_v52 }
  0x27   :  { %3263 = vmatprep.subr.bf16.mxu0 %v3290_v53 }
  0x2a   :  { %3264 = vmatpush3.bf16.msra.mxu0 %v3290_v53 }
  0x2b   :  { %3265 = vmatprep.subr.bf16.mxu0 %v3291_v54 }
  0x2e   :  { %3266 = vmatpush3.bf16.msra.mxu0 %v3291_v54 }
  0x2f   :  { %3267 = vmatprep.subr.bf16.mxu0 %v3292_v55 }
  0x32   :  { %3268 = vmatpush3.bf16.msra.mxu0 %v3292_v55 }
  0xdd   :  { %v135_v20 = vpop.f32.mrb[0].mxu0 }
  0xde   :  { %v136_v21 = vadd.f32 %v135_v20, %v50_v18  ;;  %v137_v22 = vpop.f32.mrb[1].mxu0 }
  0xdf   :  { %v138_v23 = vadd.f32 %v137_v22, %v54_v19  ;;  %v139_v24 = vpop.f32.mrb[2].mxu0  ;;  %v3603_v45 = vpop.f32.mrb[0].mxu1 }
  0xe0   :  { %v140_v25 = vadd.f32 %v139_v24, %v50_v18  ;;  %v141_v26 = vpop.f32.mrb[3].mxu0  ;;  %v3605_v46 = vpop.f32.mrb[1].mxu1 }
  0xe1   :  { %v142_v27 = vadd.f32 %v141_v26, %v54_v19  ;;  %v203_v28 = vmul.f32 %v138_v23, %v136_v21  ;;  %v3610_v48 = vpop.f32.mrb[2].mxu1 }
  0xe2   :  { %v3612_v49 = vpop.f32.mrb[3].mxu1 }
  0xe3   :  { %207 = vadd.xlane.f32.xlu0 %v203_v28  ;;  %v204_v29 = vmul.f32 %v142_v27, %v140_v25 }
  0xe5   :  { %v145_v30 = vpop.f32.mrb[4].mxu0 }
  0xe6   :  { %v146_v31 = vadd.f32 %v145_v30, %v50_v18  ;;  %v147_v32 = vpop.f32.mrb[5].mxu0 }
  0xe7   :  { %v148_v33 = vadd.f32 %v147_v32, %v54_v19  ;;  %v149_v34 = vpop.f32.mrb[6].mxu0  ;;  %209 = vadd.xlane.f32.xlu0 %v204_v29 }
  0xe8   :  { %v150_v35 = vadd.f32 %v149_v34, %v50_v18  ;;  %v151_v36 = vpop.f32.mrb[7].mxu0  ;;  %v221_v37 = vmul.f32 %v146_v31, %v138_v23 }
  0xe9   :  { %v152_v38 = vadd.f32 %v151_v36, %v54_v19  ;;  %v219_v39 = vmul.f32 %v148_v33, %v136_v21  ;;  %v205_v40 = vmul.f32 %v148_v33, %v146_v31  ;;  %v3633_v21 = vsub.s32 2, %v3583_v14 }
  0xea   :  { %v222_v41 = vmul.f32 %v150_v35, %v142_v27 }
  0xeb   :  { %223 = vadd.xlane.f32.xlu1 %v219_v39  ;;  %211 = vadd.xlane.f32.xlu0 %v205_v40  ;;  %v220_v42 = vmul.f32 %v152_v38, %v140_v25  ;;  %v206_v43 = vmul.f32 %v152_v38, %v150_v35  ;;  %v58_v31 = vrot.slane %v3591_v16, %v3633_v21 }
  0xed   :  { %v189_v35 = vadd.f32 %v3605_v46, %v58_v31  ;;  %v197_v38 = vadd.f32 %v3603_v45, %v58_v31  ;;  %v192_v16 = vadd.f32 %v3612_v49, %v58_v31  ;;  %v200_v50 = vadd.f32 %v3610_v48, %v58_v31 }
  0xef   :  { %225 = vadd.xlane.f32.xlu1 %v220_v42  ;;  %227 = vadd.xlane.f32.xlu0 %v221_v37 }
  0xf3   :  { %213 = vadd.xlane.f32.xlu1 %v206_v43 }
  0xf7   :  { %229 = vadd.xlane.f32.xlu1 %v222_v41 }
 0x170   :  { %v208_v56 = vpop.xlane.xlu0 %207 }
 0x171   :  { %v215_v60 = vmul.f32 0.17677669, %v208_v56 }
 0x174   :  { %v210_v57 = vpop.xlane.xlu0 %209 }
 0x175   :  { %v216_v63 = vmul.f32 0.17677669, %v210_v57 }
 0x178   :  { %v224_v58 = vpop.xlane.xlu1 %223  ;;  %v212_v59 = vpop.xlane.xlu0 %211 }
 0x179   :  { %v231_v61 = vmul.f32 0.17677669, %v224_v58  ;;  %v217_v0 = vmul.f32 0.17677669, %v212_v59 }
 0x17b   :  { %v235_v62 = vmax.f32 %v215_v60, %v231_v61 }
 0x17c   :  { %v226_v1 = vpop.xlane.xlu1 %225  ;;  %v228_v3 = vpop.xlane.xlu0 %227 }
 0x17d   :  { %v239_v5 = vsub.f32 %v215_v60, %v235_v62  ;;  %v251_v7 = vsub.f32 %v231_v61, %v235_v62  ;;  %v232_v8 = vmul.f32 0.17677669, %v226_v1  ;;  %v233_v9 = vmul.f32 0.17677669, %v228_v3 }
 0x17f   :  { %v243_v12 = vmul.f32 1.442695, %v239_v5  ;;  %v255_v13 = vmul.f32 1.442695, %v251_v7  ;;  %v236_v18 = vmax.f32 %v216_v63, %v232_v8  ;;  %v237_v19 = vmax.f32 %v217_v0, %v233_v9 }
 0x180   :  { %v214_v20 = vpop.xlane.xlu1 %213 }
 0x181   :  { %3421 = vpow2.f32 %v243_v12  ;;  %v240_v22 = vsub.f32 %v216_v63, %v236_v18  ;;  %v252_v23 = vsub.f32 %v232_v8, %v236_v18  ;;  %v241_v24 = vsub.f32 %v217_v0, %v237_v19 }
 0x182   :  { %3423 = vpow2.f32 %v255_v13  ;;  %v253_v25 = vsub.f32 %v233_v9, %v237_v19  ;;  %v218_v32 = vmul.f32 0.17677669, %v214_v20 }
 0x183   :  { %v245_v26 = vmul.f32 1.442695, %v240_v22  ;;  %v257_v27 = vmul.f32 1.442695, %v252_v23  ;;  %v247_v28 = vmul.f32 1.442695, %v241_v24 }
 0x184   :  { %v259_v29 = vmul.f32 1.442695, %v253_v25  ;;  %v230_v30 = vpop.xlane.xlu1 %229  ;;  %v2825_v24 = vld [vmem:[%s4453_s7] ss:$0 sm:$0xff] }
 0x185   :  { %3425 = vpow2.f32 %v245_v26  ;;  %v234_v33 = vmul.f32 0.17677669, %v230_v30 }
 0x186   :  { %3427 = vpow2.f32 %v257_v27 }
 0x187   :  { %3429 = vpow2.f32 %v247_v28  ;;  %v238_v34 = vmax.f32 %v218_v32, %v234_v33 }
 0x188   :  { %3431 = vpow2.f32 %v259_v29 }
 0x189   :  { %v242_v36 = vsub.f32 %v218_v32, %v238_v34  ;;  %v254_v37 = vsub.f32 %v234_v33, %v238_v34 }
 0x18b   :  { %v3422_v39 = vpop.eup %3421  ;;  %v249_v40 = vmul.f32 1.442695, %v242_v36  ;;  %v261_v41 = vmul.f32 1.442695, %v254_v37 }
 0x18c   :  { %v3424_v42 = vpop.eup %3423  ;;  %v271_v43 = vmul.f32 %v3422_v39, %v189_v35 }
 0x18d   :  { %v263_v44 = vadd.f32 %v3424_v42, %v3422_v39  ;;  %3433 = vpow2.f32 %v249_v40  ;;  %v275_v47 = vmul.f32 %v3424_v42, %v197_v38 }
 0x18e   :  { %3435 = vpow2.f32 %v261_v41 }
 0x18f   :  { %v3426_v51 = vpop.eup %3425  ;;  %v279_v52 = vadd.f32 %v275_v47, %v271_v43  ;;  %3437 = vrcp.f32 %v263_v44 }
 0x190   :  { %v3428_v46 = vpop.eup %3427  ;;  %v272_v53 = vmul.f32 %v3426_v51, %v192_v16 }
 0x191   :  { %v3430_v54 = vpop.eup %3429  ;;  %v264_v45 = vadd.f32 %v3428_v46, %v3426_v51  ;;  %v276_v55 = vmul.f32 %v3428_v46, %v200_v50 }
 0x192   :  { %v3432_v56 = vpop.eup %3431  ;;  %v273_v57 = vmul.f32 %v3430_v54, %v197_v38 }
 0x193   :  { %3439 = vrcp.f32 %v264_v45  ;;  %v277_v58 = vmul.f32 %v3432_v56, %v189_v35  ;;  %v280_v59 = vadd.f32 %v276_v55, %v272_v53  ;;  %v265_v49 = vadd.f32 %v3432_v56, %v3430_v54  ;;  %v488_v56 = vld [vmem:[%s4450_s4] sm:$0xff] }
 0x195   :  { %v281_v60 = vadd.f32 %v277_v58, %v273_v57  ;;  %3441 = vrcp.f32 %v265_v49  ;;  %v496_v57 = vld [vmem:[%s4450_s4 + $0x40] sm:$0xff]  ;;  %v490_v58 = vld [vmem:[%s4450_s4 + $0x10] sm:$0xff] }
 0x196   :  { %v498_v49 = vld [vmem:[%s4450_s4 + $0x50] sm:$0xff] }
 0x197   :  { %v3434_v61 = vpop.eup %3433 }
 0x198   :  { %v3436_v62 = vpop.eup %3435  ;;  %v274_v63 = vmul.f32 %v3434_v61, %v200_v50 }
 0x199   :  { %v266_v48 = vadd.f32 %v3436_v62, %v3434_v61  ;;  %v278_v0 = vmul.f32 %v3436_v62, %v192_v16  ;;  %v3438_v1 = vpop.eup %3437  ;;  %v2832_v61 = vcombine.low %v490_v58, %v498_v49  ;;  %v2833_v62 = vcombine.high %v490_v58, %v498_v49 }
 0x19a   :  { %v283_v7 = vmul.f32 %v3438_v1, %v279_v52 }
 0x19b   :  { %3443 = vrcp.f32 %v266_v48  ;;  %v282_v3 = vadd.f32 %v278_v0, %v274_v63  ;;  %876 = vmatprep.subr.bf16.mxu0 %v2833_v62  ;;  %v504_v63 = vld [vmem:[%s4450_s4 + $0x80] sm:$0xff]  ;;  %v506_v0 = vld [vmem:[%s4450_s4 + $0x90] sm:$0xff] }
 0x19c   :  { %v512_v48 = vld [vmem:[%s4450_s4 + $0xc0] sm:$0xff]  ;;  %v502_v62 = vld [vmem:[%s4450_s4 + $0x70] sm:$0xff] }
 0x19d   :  { %v3440_v5 = vpop.eup %3439  ;;  %v2845_v1 = vcombine.high %v504_v63, %v512_v48 }
 0x19e   :  { %v284_v8 = vmul.f32 %v3440_v5, %v280_v59  ;;  %v2829_v59 = vcombine.high %v488_v56, %v496_v57  ;;  %v2844_v5 = vcombine.low %v504_v63, %v512_v48 }
 0x19f   :  { %v3442_v12 = vpop.eup %3441 }
 0x1a0   :  { %v287_v9 = vpack.c.bf16 %v284_v8, %v283_v7  ;;  %v285_v18 = vmul.f32 %v3442_v12, %v281_v60  ;;  %v2828_v60 = vcombine.low %v488_v56, %v496_v57  ;;  %770 = vmatprep.subr.bf16.mxu1 %v2829_v59  ;;  %v497_v12 = vld [vmem:[%s4450_s4 + $0x48] sm:$0xff] }
 0x1a2   :  { %3269 = vmatprep.mubr.bf16.mxu0 %v287_v9  ;;  %771 = vmatpush1.bf16.msra.mxu1 %v2828_v60  ;;  %v489_v9 = vld [vmem:[%s4450_s4 + $0x8] sm:$0xff] }
 0x1a3   :  { %772 = vmatprep.subr.bf16.mxu1 %v2845_v1  ;;  %v507_v1 = vld [vmem:[%s4450_s4 + $0x98] sm:$0xff] }
 0x1a5   :  { %v3444_v13 = vpop.eup %3443 }
 0x1a6   :  { %v286_v19 = vmul.f32 %v3444_v13, %v282_v3  ;;  %v514_v3 = vld [vmem:[%s4450_s4 + $0xd0] sm:$0xff]  ;;  %773 = vmatpush1.bf16.msra.mxu1 %v2844_v5  ;;  %v2830_v13 = vcombine.low %v489_v9, %v497_v12 }
 0x1a7   :  { %v2848_v7 = vcombine.low %v506_v0, %v514_v3  ;;  %v2849_v8 = vcombine.high %v506_v0, %v514_v3  ;;  %v515_v3 = vld [vmem:[%s4450_s4 + $0xd8] sm:$0xff]  ;;  %v510_v5 = vld [vmem:[%s4450_s4 + $0xb0] sm:$0xff] }
 0x1a8   :  { %v288_v20 = vpack.c.bf16 %v286_v19, %v285_v18  ;;  %v2831_v18 = vcombine.high %v489_v9, %v497_v12  ;;  %v492_v19 = vld [vmem:[%s4450_s4 + $0x20] sm:$0xff]  ;;  %v2851_v12 = vcombine.high %v507_v1, %v515_v3 }
 0x1aa   :  { %3270 = vmatmul.mubr.bf16.vlgmr.msra.gmra.mrb[8].mxu0 %v288_v20  ;;  %823 = vmatprep.subr.bf16.mxu1 %v2831_v18  ;;  %v500_v20 = vld [vmem:[%s4450_s4 + $0x60] sm:$0xff]  ;;  %v493_v18 = vld [vmem:[%s4450_s4 + $0x28] sm:$0xff] }
 0x1ab   :  { %908 = vmatprep.mubr.bf16.mxu0 %v3485_v2  ;;  %877 = vmatpush1.bf16.msra.mxu0 %v2832_v61  ;;  %v494_v61 = vld [vmem:[%s4450_s4 + $0x30] sm:$0xff] }
 0x1ac   :  { %878 = vmatprep.subr.bf16.mxu0 %v2849_v8  ;;  %v2841_v0 = vcombine.high %v494_v61, %v502_v62  ;;  %v2840_v9 = vcombine.low %v494_v61, %v502_v62  ;;  %v3319_v61 = vld [vmem:[%s4452_s6 + $0xa0] sm:$0xff]   ;;  %v3321_v62 = vld [vmem:[%s4452_s6 + $0xe8] sm:$0xff]  }
 0x1af   :  { %879 = vmatpush1.bf16.msra.mxu0 %v2848_v7  ;;  %v518_v7 = vld [vmem:[%s4450_s4 + $0xf0] sm:$0xff] }
 0x27d   :  { %v3271_v22 = vpop.f32.mrb[8].mxu0 }
 0x27e   :  { %v387_v23 = vpop.f32.mrb[9].mxu0  ;;  %v404_v25 = vadd.f32 %v3271_v22, %v3569_v10  ;;  %v2836_v22 = vcombine.low %v492_v19, %v500_v20 }
 0x27f   :  { %v402_v26 = vadd.f32 %v387_v23, %v3547_v4  ;;  %v3272_v27 = vpop.f32.mrb[10].mxu0  ;;  %v2837_v23 = vcombine.high %v492_v19, %v500_v20  ;;  %v501_v19 = vld [vmem:[%s4450_s4 + $0x68] sm:$0xff]  ;;  %v2850_v20 = vcombine.low %v507_v1, %v515_v3  ;;  %v3327_v1 = vld [vmem:[%s4452_s6 + $0xb0] sm:$0xff]   ;;  %v3329_v3 = vld [vmem:[%s4452_s6 + $0xf8] sm:$0xff]  }
 0x280   :  { %v390_v28 = vpop.f32.mrb[11].mxu0  ;;  %v405_v29 = vadd.f32 %v3272_v27, %v3574_v11  ;;  %v413_v34 = vadd.f32 %v2825_v24, %v404_v25 }
 0x281   :  { %v403_v30 = vadd.f32 %v390_v28, %v3555_v6  ;;  %v411_v31 = vadd.f32 %v2825_v24, %v402_v26  ;;  %982 = vmatprep.subr.bf16.mxu0 %v2837_v23  ;;  %v2839_v23 = vcombine.high %v493_v18, %v501_v19 }
 0x282   :  { %v414_v36 = vadd.f32 %v2825_v24, %v405_v29  ;;  %v423_v10 = vsel %vm94_vm0, %v413_v34, 0.0 }
 0x283   :  { %v417_v32 = vsel %vm94_vm0, %v411_v31, 0.0  ;;  %v412_v33 = vadd.f32 %v2825_v24, %v403_v30 }
 0x284   :  { %418 = vadd.xlane.f32.xlu0 %v417_v32  ;;  %v426_v4 = vsel %vm94_vm0, %v414_v36, 0.0 }
 0x285   :  { %v420_v35 = vsel %vm94_vm0, %v412_v33, 0.0 }
 0x286   :  { %421 = vadd.xlane.f32.xlu1 %v420_v35 }
 0x288   :  { %424 = vadd.xlane.f32.xlu0 %v423_v10  ;;  %v2826_v10 = vld [vmem:[%s4453_s7 + $0x2] ss:$0 sm:$0xff] }
 0x28a   :  { %427 = vadd.xlane.f32.xlu1 %v426_v4 }
 0x311   :  { %v419_v37 = vpop.xlane.xlu0 %418 }
 0x312   :  { %v430_v11 = vmul.f32 0.03125, %v419_v37 }
 0x313   :  { %v422_v38 = vpop.xlane.xlu1 %421 }
 0x314   :  { %v3653_v6 = vsub.f32 %v411_v31, %v430_v11  ;;  %v431_v39 = vmul.f32 0.03125, %v422_v38 }
 0x315   :  { %v425_v40 = vpop.xlane.xlu0 %424 }
 0x316   :  { %v3655_v41 = vsub.f32 %v412_v33, %v431_v39  ;;  %v432_v42 = vmul.f32 0.03125, %v425_v40  ;;  %v438_v43 = vmul.f32 %v3653_v6, %v3653_v6  ;;  %v2827_v40 = vld [vmem:[%s4453_s7 + $0x3] ss:$0 sm:$0xff] }
 0x317   :  { %v428_v16 = vpop.xlane.xlu1 %427 }
 0x318   :  { %v3659_v44 = vsub.f32 %v413_v34, %v432_v42  ;;  %v433_v47 = vmul.f32 0.03125, %v428_v16  ;;  %v442_v50 = vsel %vm94_vm0, %v438_v43, 0.0  ;;  %v439_v51 = vmul.f32 %v3655_v41, %v3655_v41  ;;  %v505_v16 = vld [vmem:[%s4450_s4 + $0x88] sm:$0xff] }
 0x319   :  { %443 = vadd.xlane.f32.xlu0 %v442_v50 }
 0x31a   :  { %v3664_v52 = vsub.f32 %v414_v36, %v433_v47  ;;  %v445_v46 = vsel %vm94_vm0, %v439_v51, 0.0  ;;  %v440_v53 = vmul.f32 %v3659_v44, %v3659_v44  ;;  %v513_v47 = vld [vmem:[%s4450_s4 + $0xc8] sm:$0xff] }
 0x31b   :  { %446 = vadd.xlane.f32.xlu1 %v445_v46  ;;  %v508_v46 = vld [vmem:[%s4450_s4 + $0xa0] sm:$0xff]  ;;  %v2846_v58 = vcombine.low %v505_v16, %v513_v47 }
 0x31c   :  { %v448_v54 = vsel %vm94_vm0, %v440_v53, 0.0  ;;  %v441_v45 = vmul.f32 %v3664_v52, %v3664_v52  ;;  %v516_v53 = vld [vmem:[%s4450_s4 + $0xe0] sm:$0xff] }
 0x31d   :  { %449 = vadd.xlane.f32.xlu0 %v448_v54  ;;  %v2853_v57 = vcombine.high %v508_v46, %v516_v53  ;;  %v2852_v60 = vcombine.low %v508_v46, %v516_v53  ;;  %v3304_v46 = vld [vmem:[%s4452_s6 + $0x80] sm:$0xff]   ;;  %v3306_v53 = vld [vmem:[%s4452_s6 + $0xc8] sm:$0xff]  }
 0x31e   :  { %v451_v55 = vsel %vm94_vm0, %v441_v45, 0.0 }
 0x31f   :  { %452 = vadd.xlane.f32.xlu1 %v451_v55  ;;  %v2847_v55 = vcombine.high %v505_v16, %v513_v47  ;;  %v3305_v16 = vld [vmem:[%s4452_s6 + $0x68] sm:$0xff]  }
 0x3a6   :  { %v444_v24 = vpop.xlane.xlu0 %443 }
 0x3a7   :  { %v454_v25 = vmul.f32 0.03125, %v444_v24  ;;  %v3293_v24 = vld [vmem:[%s4452_s6 + $0x40] sm:$0xff]  }
 0x3a8   :  { %v447_v26 = vpop.xlane.xlu1 %446 }
 0x3a9   :  { %v458_v27 = vadd.f32 1e-05, %v454_v25  ;;  %v455_v28 = vmul.f32 0.03125, %v447_v26  ;;  %v509_v25 = vld [vmem:[%s4450_s4 + $0xa8] sm:$0xff] }
 0x3aa   :  { %v450_v29 = vpop.xlane.xlu0 %449  ;;  %v517_v26 = vld [vmem:[%s4450_s4 + $0xe8] sm:$0xff] }
 0x3ab   :  { %3445 = vrsqrt.f32 %v458_v27  ;;  %v459_v30 = vadd.f32 1e-05, %v455_v28  ;;  %v456_v31 = vmul.f32 0.03125, %v450_v29  ;;  %v2838_v27 = vcombine.low %v493_v18, %v501_v19  ;;  %v3294_v28 = vld [vmem:[%s4452_s6] sm:$0xff]  }
 0x3ac   :  { %v453_v32 = vpop.xlane.xlu1 %452  ;;  %v2855_v29 = vcombine.high %v509_v25, %v517_v26  ;;  %v3958_v18 = vld [vmem:[%s4451_s5] sm:$0xff]  ;;  %v546_v19 = vsub.s32 5, %v3583_v14 }
 0x3ad   :  { %3447 = vrsqrt.f32 %v459_v30  ;;  %v460_v33 = vadd.f32 1e-05, %v456_v31  ;;  %v457_v34 = vmul.f32 0.03125, %v453_v32  ;;  %v3295_v30 = vld [vmem:[%s4452_s6 + $0x48] sm:$0xff]   ;;  %v495_v31 = vld [vmem:[%s4450_s4 + $0x38] sm:$0xff] }
 0x3ae   :  { %v503_v32 = vld [vmem:[%s4450_s4 + $0x78] sm:$0xff] }
 0x3af   :  { %3449 = vrsqrt.f32 %v460_v33  ;;  %v461_v35 = vadd.f32 1e-05, %v457_v34  ;;  %v2854_v33 = vcombine.low %v509_v25, %v517_v26  ;;  %v3296_v34 = vld [vmem:[%s4452_s6 + $0x8] sm:$0xff]  }
 0x3b1   :  { %3451 = vrsqrt.f32 %v461_v35  ;;  %v2843_v35 = vcombine.high %v495_v31, %v503_v32 }
 0x3b5   :  { %v3446_v36 = vpop.eup %3445 }
 0x3b6   :  { %v466_v4 = vmul.f32 %v3446_v36, %v3653_v6  ;;  %v3297_v36 = vld [vmem:[%s4452_s6 + $0x50] sm:$0xff]  }
 0x3b7   :  { %v3448_v37 = vpop.eup %3447 }
 0x3b8   :  { %v474_v11 = vmul.f32 %v2826_v10, %v466_v4  ;;  %v467_v38 = vmul.f32 %v3448_v37, %v3655_v41  ;;  %v3299_v4 = vld [vmem:[%s4452_s6 + $0x58] sm:$0xff]  }
 0x3b9   :  { %v3450_v39 = vpop.eup %3449  ;;  %v3300_v37 = vld [vmem:[%s4452_s6 + $0x18] sm:$0xff]  }
 0x3ba   :  { %v475_v42 = vmul.f32 %v2826_v10, %v467_v38  ;;  %v3723_v6 = vadd.f32 %v2827_v40, %v474_v11  ;;  %v468_v41 = vmul.f32 %v3450_v39, %v3659_v44  ;;  %v491_v44 = vld [vmem:[%s4450_s4 + $0x18] sm:$0xff]  ;;  %v3301_v39 = vld [vmem:[%s4452_s6 + $0x60] sm:$0xff]  }
 0x3bb   :  { %v3452_v43 = vpop.eup %3451  ;;  %v511_v11 = vld [vmem:[%s4450_s4 + $0xb8] sm:$0xff] }
 0x3bc   :  { %v3725_v50 = vadd.f32 %v2827_v40, %v475_v42  ;;  %v469_v51 = vmul.f32 %v3452_v43, %v3664_v52  ;;  %v499_v52 = vld [vmem:[%s4450_s4 + $0x58] sm:$0xff]  ;;  %v476_v56 = vmul.f32 %v2826_v10, %v468_v41  ;;  %v3303_v43 = vld [vmem:[%s4452_s6 + $0x20] sm:$0xff]  }
 0x3bd   :  { %v2835_v49 = vcombine.high %v491_v44, %v499_v52  ;;  %v2834_v8 = vcombine.low %v491_v44, %v499_v52  ;;  %v519_v38 = vld [vmem:[%s4450_s4 + $0xf8] sm:$0xff]  ;;  %v3302_v41 = vld [vmem:[%s4452_s6 + $0xc0] sm:$0xff]   ;;  %v3312_v44 = vld [vmem:[%s4452_s6 + $0x90] sm:$0xff]  }
 0x3be   :  { %v3737_v54 = vpack.c.bf16 %v3725_v50, %v3723_v6  ;;  %v477_v45 = vmul.f32 %v2826_v10, %v469_v51  ;;  %v3759_v63 = vadd.f32 %v2827_v40, %v476_v56  ;;  %v3298_v10 = vld [vmem:[%s4452_s6 + $0x10] sm:$0xff]   ;;  %v2859_v42 = vcombine.high %v511_v11, %v519_v38  ;;  %v3307_v51 = vld [vmem:[%s4452_s6 + $0x28] sm:$0xff]   ;;  %v3313_v52 = vld [vmem:[%s4452_s6 + $0x78] sm:$0xff]  }
 0x3bf   :  { %v2858_v47 = vcombine.low %v511_v11, %v519_v38  ;;  %v3314_v56 = vld [vmem:[%s4452_s6 + $0xd8] sm:$0xff]  }
 0x3c0   :  { %2860 = vmatmul.mubr.msk.bf16.vlgmr.msra.gmra.mrb[4].mxu1 %vm94_vm0, %v3737_v54  ;;  %2864 = vmatmul.mubr.msk.bf16.vlgmr.msra.gmra.mrb[12].mxu0 %vm94_vm0, %v3737_v54  ;;  %v3750_v59 = vadd.f32 %v2827_v40, %v477_v45  ;;  %v2842_v40 = vcombine.low %v495_v31, %v503_v32  ;;  %v3308_v45 = vld [vmem:[%s4452_s6 + $0x88] sm:$0xff]  }
 0x3c1   :  { %824 = vmatpush1.bf16.msra.mxu1 %v2830_v13  ;;  %812 = vmatprep.mubr.bf16.mxu1 %v3485_v2  ;;  %v2857_v13 = vcombine.high %v510_v5, %v518_v7 }
 0x3c2   :  { %825 = vmatprep.subr.bf16.mxu1 %v2847_v55  ;;  %918 = vmatprep.mubr.bf16.mxu0 %v3485_v2  ;;  %v3763_v48 = vpack.c.bf16 %v3750_v59, %v3759_v63  ;;  %v3309_v55 = vld [vmem:[%s4452_s6 + $0x70] sm:$0xff]  }
 0x3c3   :  { %983 = vmatpush1.bf16.msra.mxu0 %v2836_v22  ;;  %v2856_v22 = vcombine.low %v510_v5, %v518_v7  ;;  %v3331_v5 = vld [vmem:[%s4452_s6 + $0xb8] sm:$0xff]   ;;  %v3334_v7 = vld [vmem:[%s4452_s6 + $0x1c0] sm:$0xff]  }
 0x3c4   :  { %984 = vmatprep.subr.bf16.mxu0 %v2853_v57  ;;  %v3315_v57 = vld [vmem:[%s4452_s6 + $0x38] sm:$0xff]  }
 0x3c5   :  { %826 = vmatpush1.bf16.msra.mxu1 %v2846_v58  ;;  %v3316_v58 = vld [vmem:[%s4452_s6 + $0x98] sm:$0xff]  }
 0x3c6   :  { %929 = vmatprep.subr.bf16.mxu1 %v2835_v49  ;;  %v3317_v49 = vld [vmem:[%s4452_s6 + $0xe0] sm:$0xff]  }
 0x3c7   :  { %985 = vmatpush1.bf16.msra.mxu0 %v2852_v60  ;;  %v3318_v60 = vld [vmem:[%s4452_s6 + $0x140] sm:$0xff]  }
 0x3c8   :  { %2861 = vmatmul.mubr.msk.bf16.gmra.mrb[8].mxu1 %vm94_vm0, %v3763_v48  ;;  %2865 = vmatmul.mubr.msk.bf16.gmra.mrb[16].mxu0 %vm94_vm0, %v3763_v48 }
 0x3c9   :  { %855 = vmatprep.mubr.bf16.mxu1 %v3485_v2  ;;  %1014 = vmatprep.mubr.bf16.mxu0 %v3485_v2 }
 0x3ca   :  { %1088 = vmatprep.subr.bf16.mxu0 %v2841_v0  ;;  %v3325_v0 = vld [vmem:[%s4452_s6 + $0xf0] sm:$0xff]  }
 0x3d0   :  { %2862 = vmatmul.mubr.msk.bf16.vlgmr.msra.gmra.mrb[12].mxu1 %vm94_vm0, %v3737_v54  ;;  %2868 = vmatmul.mubr.msk.bf16.vlgmr.msra.gmra.mrb[20].mxu0 %vm94_vm0, %v3737_v54 }
 0x3d1   :  { %865 = vmatprep.mubr.bf16.mxu1 %v3485_v2  ;;  %1024 = vmatprep.mubr.bf16.mxu0 %v3485_v2 }
 0x3d2   :  { %930 = vmatpush1.bf16.msra.mxu1 %v2834_v8  ;;  %1089 = vmatpush1.bf16.msra.mxu0 %v2840_v9  ;;  %v550_v8 = vsub.s32 6, %v3583_v14  ;;  %v3947_v9 = vld [vmem:[%s4451_s5 + $0x8] sm:$0xff] }
 0x3d3   :  { %931 = vmatprep.subr.bf16.mxu1 %v2851_v12  ;;  %1090 = vmatprep.subr.bf16.mxu0 %v2857_v13  ;;  %v542_v13 = vsub.s32 4, %v3583_v14 }
 0x3d4   :  { %v3952_v12 = vrot.slane %v3947_v9, %v550_v8 }
 0x3d6   :  { %932 = vmatpush1.bf16.msra.mxu1 %v2850_v20  ;;  %1091 = vmatpush1.bf16.msra.mxu0 %v2856_v22  ;;  %v527_v20 = vrot.slane %v3958_v18, %v3586_v15  ;;  %v543_v22 = vrot.slane %v3958_v18, %v542_v13 }
 0x3d7   :  { %1035 = vmatprep.subr.bf16.mxu1 %v2839_v23  ;;  %3021 = vmatprep.subr.bf16.mxu0 %v3293_v24  ;;  %v531_v23 = vrot.slane %v3958_v18, %v3594_v17  ;;  %v547_v24 = vrot.slane %v3958_v18, %v546_v19 }
 0x3d8   :  { %2863 = vmatmul.mubr.msk.bf16.gmra.mrb[16].mxu1 %vm94_vm0, %v3763_v48  ;;  %2869 = vmatmul.mubr.msk.bf16.gmra.mrb[24].mxu0 %vm94_vm0, %v3763_v48 }
 0x3d9   :  { %961 = vmatprep.mubr.bf16.mxu1 %v3485_v2  ;;  %1120 = vmatprep.mubr.bf16.mxu0 %v3485_v2 }
 0x3e0   :  { %2866 = vmatmul.mubr.msk.bf16.vlgmr.msra.gmra.mrb[20].mxu1 %vm94_vm0, %v3737_v54  ;;  %2872 = vmatmul.mubr.msk.bf16.vlgmr.msra.gmra.mrb[28].mxu0 %vm94_vm0, %v3737_v54 }
 0x3e1   :  { %971 = vmatprep.mubr.bf16.mxu1 %v3485_v2  ;;  %1130 = vmatprep.mubr.bf16.mxu0 %v3485_v2 }
 0x3e2   :  { %1036 = vmatpush1.bf16.msra.mxu1 %v2838_v27  ;;  %3022 = vmatpush3.bf16.msra.mxu0 %v3294_v28 }
 0x3e3   :  { %1037 = vmatprep.subr.bf16.mxu1 %v2855_v29  ;;  %3023 = vmatprep.subr.bf16.mxu0 %v3295_v30 }
 0x3e6   :  { %1038 = vmatpush1.bf16.msra.mxu1 %v2854_v33  ;;  %3024 = vmatpush3.bf16.msra.mxu0 %v3296_v34 }
 0x3e7   :  { %1141 = vmatprep.subr.bf16.mxu1 %v2843_v35  ;;  %3025 = vmatprep.subr.bf16.mxu0 %v3297_v36 }
 0x3e8   :  { %2867 = vmatmul.mubr.msk.bf16.gmra.mrb[24].mxu1 %vm94_vm0, %v3763_v48  ;;  %2873 = vmatmul.mubr.msk.bf16.gmra.mrb[32].mxu0 %vm94_vm0, %v3763_v48 }
 0x3e9   :  { %1067 = vmatprep.mubr.bf16.mxu1 %v3485_v2 }
 0x3ea   :  { %3026 = vmatpush3.bf16.msra.mxu0 %v3298_v10 }
 0x3eb   :  { %3027 = vmatprep.subr.bf16.mxu0 %v3299_v4 }
 0x3ee   :  { %3028 = vmatpush3.bf16.msra.mxu0 %v3300_v37 }
 0x3ef   :  { %3029 = vmatprep.subr.bf16.mxu0 %v3301_v39 }
 0x3f0   :  { %2870 = vmatmul.mubr.msk.bf16.vlgmr.msra.gmra.mrb[28].mxu1 %vm94_vm0, %v3737_v54 }
 0x3f1   :  { %1077 = vmatprep.mubr.bf16.mxu1 %v3485_v2  ;;  %1142 = vmatpush1.bf16.msra.mxu1 %v2842_v40 }
 0x3f2   :  { %1143 = vmatprep.subr.bf16.mxu1 %v2859_v42  ;;  %3030 = vmatpush3.bf16.msra.mxu0 %v3303_v43 }
 0x3f3   :  { %3031 = vmatprep.subr.bf16.mxu0 %v3305_v16 }
 0x3f5   :  { %1144 = vmatpush1.bf16.msra.mxu1 %v2858_v47 }
 0x3f6   :  { %3049 = vmatprep.subr.bf16.mxu1 %v3302_v41  ;;  %3032 = vmatpush3.bf16.msra.mxu0 %v3307_v51 }
 0x3f7   :  { %3033 = vmatprep.subr.bf16.mxu0 %v3309_v55 }
 0x3f8   :  { %2871 = vmatmul.mubr.msk.bf16.gmra.mrb[32].mxu1 %vm94_vm0, %v3763_v48 }
 0x3f9   :  { %1173 = vmatprep.mubr.bf16.mxu1 %v3485_v2 }
 0x400   :  { %2874 = vmatmul.mubr.msk.bf16.vlgmr.msra.gmra.mrb[36].mxu1 %vm94_vm0, %v3737_v54  ;;  %v3310_v54 = vld [vmem:[%s4452_s6 + $0xd0] sm:$0xff]  }
 0x401   :  { %1183 = vmatprep.mubr.bf16.mxu1 %v3485_v2  ;;  %3050 = vmatpush3.bf16.msra.mxu1 %v3304_v46  ;;  %v3311_v2 = vld [vmem:[%s4452_s6 + $0x30] sm:$0xff]  }
 0x402   :  { %3051 = vmatprep.subr.bf16.mxu1 %v3306_v53  ;;  %3034 = vmatpush3.bf16.msra.mxu0 %v3311_v2  ;;  %v3320_v2 = vld [vmem:[%s4452_s6 + $0x100] sm:$0xff]  }
 0x403   :  { %3035 = vmatprep.subr.bf16.mxu0 %v3313_v52 }
 0x405   :  { %3052 = vmatpush3.bf16.msra.mxu1 %v3308_v45 }
 0x406   :  { %3053 = vmatprep.subr.bf16.mxu1 %v3310_v54  ;;  %3036 = vmatpush3.bf16.msra.mxu0 %v3315_v57 }
 0x407   :  { %3077 = vmatprep.subr.bf16.mxu0 %v3318_v60 }
 0x408   :  { %2875 = vmatmul.mubr.msk.bf16.gmra.mrb[40].mxu1 %vm94_vm0, %v3763_v48  ;;  %v3323_v48 = vld [vmem:[%s4452_s6 + $0xa8] sm:$0xff]  }
 0x409   :  { %3054 = vmatpush3.bf16.msra.mxu1 %v3312_v44  ;;  %v538_v44 = vsub.s32 3, %v3583_v14 }
 0x40a   :  { %3055 = vmatprep.subr.bf16.mxu1 %v3314_v56 }
 0x40d   :  { %3056 = vmatpush3.bf16.msra.mxu1 %v3316_v58 }
 0x40e   :  { %3057 = vmatprep.subr.bf16.mxu1 %v3317_v49  ;;  %v3322_v49 = vld [vmem:[%s4452_s6 + $0x148] sm:$0xff]  }
 0x411   :  { %3058 = vmatpush3.bf16.msra.mxu1 %v3319_v61 }
 0x412   :  { %3059 = vmatprep.subr.bf16.mxu1 %v3321_v62 }
 0x415   :  { %3060 = vmatpush3.bf16.msra.mxu1 %v3323_v48 }
 0x416   :  { %3061 = vmatprep.subr.bf16.mxu1 %v3325_v0 }
 0x419   :  { %3062 = vmatpush3.bf16.msra.mxu1 %v3327_v1 }
 0x41a   :  { %3063 = vmatprep.subr.bf16.mxu1 %v3329_v3 }
 0x41d   :  { %3064 = vmatpush3.bf16.msra.mxu1 %v3331_v5 }
 0x41e   :  { %3105 = vmatprep.subr.bf16.mxu1 %v3334_v7  ;;  %v3984_v7 = vrot.slane %v3958_v18, %v3633_v21 }
 0x493   :  { %v804_v25 = vpop.f32.mrb[4].mxu1  ;;  %v910_v26 = vpop.f32.mrb[12].mxu0 }
 0x494   :  { %v805_v27 = vadd.f32 %v804_v25, %v527_v20  ;;  %v911_v28 = vadd.f32 %v910_v26, %v543_v22  ;;  %v806_v29 = vpop.f32.mrb[5].mxu1  ;;  %v912_v30 = vpop.f32.mrb[13].mxu0  ;;  %v3988_v25 = vrot.slane %v3947_v9, %v3586_v15 }
 0x495   :  { %v807_v31 = vadd.f32 %v806_v29, %v531_v23  ;;  %v913_v32 = vadd.f32 %v912_v30, %v547_v24  ;;  %v808_v33 = vpop.f32.mrb[6].mxu1  ;;  %v914_v34 = vpop.f32.mrb[14].mxu0 }
 0x496   :  { %v809_v35 = vadd.f32 %v808_v33, %v527_v20  ;;  %v915_v36 = vadd.f32 %v914_v34, %v543_v22  ;;  %v810_v10 = vpop.f32.mrb[7].mxu1  ;;  %v916_v4 = vpop.f32.mrb[15].mxu0  ;;  %v1194_v38 = vmax.f32 %v805_v27, 0.0  ;;  %v1198_v39 = vmax.f32 %v911_v28, 0.0  ;;  %v3324_v28 = vld [vmem:[%s4452_s6 + $0x108] sm:$0xff]  }
 0x497   :  { %v811_v37 = vadd.f32 %v810_v10, %v531_v23  ;;  %v917_v11 = vadd.f32 %v916_v4, %v547_v24  ;;  %v1195_v43 = vmax.f32 %v807_v31, 0.0  ;;  %v1199_v16 = vmax.f32 %v913_v32, 0.0 }
 0x498   :  { %v1210_v40 = vmax.f32 %v809_v35, 0.0  ;;  %v1214_v42 = vmax.f32 %v915_v36, 0.0 }
 0x499   :  { %v1211_v47 = vmax.f32 %v811_v37, 0.0  ;;  %v1215_v41 = vmax.f32 %v917_v11, 0.0  ;;  %v3328_v11 = vld [vmem:[%s4452_s6 + $0x110] sm:$0xff]  }
 0x49a   :  { %v1258_v51 = vpack.c.bf16 %v1210_v40, %v1194_v38  ;;  %v3971_v46 = vpack.c.bf16 %v1214_v42, %v1198_v39 }
 0x49b   :  { %v1259_v53 = vpack.c.bf16 %v1211_v47, %v1195_v43  ;;  %v3973_v45 = vpack.c.bf16 %v1215_v41, %v1199_v16  ;;  %v814_v55 = vpop.f32.mrb[8].mxu1  ;;  %v920_v54 = vpop.f32.mrb[16].mxu0  ;;  %v3330_v43 = vld [vmem:[%s4452_s6 + $0x158] sm:$0xff]  }
 0x49c   :  { %v815_v52 = vadd.f32 %v814_v55, %v527_v20  ;;  %v921_v56 = vadd.f32 %v920_v54, %v543_v22  ;;  %v816_v57 = vpop.f32.mrb[9].mxu1  ;;  %v922_v58 = vpop.f32.mrb[17].mxu0 }
 0x49d   :  { %v817_v60 = vadd.f32 %v816_v57, %v531_v23  ;;  %v923_v61 = vadd.f32 %v922_v58, %v547_v24  ;;  %v818_v62 = vpop.f32.mrb[10].mxu1  ;;  %v924_v48 = vpop.f32.mrb[18].mxu0  ;;  %2351 = vmatprep.mubr.bf16.mxu0 %v1259_v53  ;;  %v3332_v57 = vld [vmem:[%s4452_s6 + $0x118] sm:$0xff]  }
 0x49e   :  { %v819_v0 = vadd.f32 %v818_v62, %v527_v20  ;;  %v925_v1 = vadd.f32 %v924_v48, %v543_v22  ;;  %v820_v3 = vpop.f32.mrb[11].mxu1  ;;  %v926_v5 = vpop.f32.mrb[19].mxu0  ;;  %2352 = vmatmul.mubr.bf16.vlgmr.msra.gmra.mrb[36].mxu0 %v1258_v51  ;;  %v3996_v20 = vrot.slane %v3958_v18, %v538_v44  ;;  %v4000_v22 = vrot.slane %v3947_v9, %v3594_v17  ;;  %v3333_v62 = vld [vmem:[%s4452_s6 + $0x160] sm:$0xff]  }
 0x49f   :  { %v821_v26 = vadd.f32 %v820_v3, %v531_v23  ;;  %v927_v27 = vadd.f32 %v926_v5, %v547_v24  ;;  %3078 = vmatpush3.bf16.msra.mxu0 %v3320_v2  ;;  %v1226_v29 = vmax.f32 %v815_v52, 0.0  ;;  %v1230_v30 = vmax.f32 %v921_v56, 0.0  ;;  %v3326_v23 = vld [vmem:[%s4452_s6 + $0x150] sm:$0xff]  }
 0x4a0   :  { %v1242_v15 = vmax.f32 %v819_v0, 0.0  ;;  %v1246_v31 = vmax.f32 %v925_v1, 0.0  ;;  %3079 = vmatprep.subr.bf16.mxu0 %v3322_v49  ;;  %v1227_v24 = vmax.f32 %v817_v60, 0.0  ;;  %v1231_v32 = vmax.f32 %v923_v61, 0.0 }
 0x4a1   :  { %v1243_v33 = vmax.f32 %v821_v26, 0.0  ;;  %v1247_v34 = vmax.f32 %v927_v27, 0.0 }
 0x4a2   :  { %v1274_v35 = vpack.c.bf16 %v1242_v15, %v1226_v29  ;;  %v4005_v36 = vpack.c.bf16 %v1246_v31, %v1230_v30  ;;  %v3335_v15 = vld [vmem:[%s4452_s6 + $0x120] sm:$0xff]  }
 0x4a3   :  { %v1275_v10 = vpack.c.bf16 %v1243_v33, %v1227_v24  ;;  %v4007_v4 = vpack.c.bf16 %v1247_v34, %v1231_v32  ;;  %3080 = vmatpush3.bf16.msra.mxu0 %v3324_v28  ;;  %v857_v17 = vpop.f32.mrb[12].mxu1  ;;  %v1016_v37 = vpop.f32.mrb[20].mxu0  ;;  %v3336_v31 = vld [vmem:[%s4452_s6 + $0x180] sm:$0xff]   ;;  %v3337_v34 = vld [vmem:[%s4452_s6 + $0x168] sm:$0xff]  }
 0x4a4   :  { %v858_v38 = vadd.f32 %v857_v17, %v3984_v7  ;;  %v1017_v39 = vadd.f32 %v1016_v37, %v3988_v25  ;;  %v859_v40 = vpop.f32.mrb[13].mxu1  ;;  %v1018_v42 = vpop.f32.mrb[21].mxu0  ;;  %3081 = vmatprep.subr.bf16.mxu0 %v3326_v23 }
 0x4a5   :  { %v860_v16 = vadd.f32 %v859_v40, %v3996_v20  ;;  %v1019_v47 = vadd.f32 %v1018_v42, %v4000_v22  ;;  %v861_v41 = vpop.f32.mrb[14].mxu1  ;;  %v1020_v51 = vpop.f32.mrb[22].mxu0  ;;  %2359 = vmatprep.mubr.bf16.mxu0 %v1275_v10 }
 0x4a6   :  { %v862_v53 = vadd.f32 %v861_v41, %v3984_v7  ;;  %v1021_v55 = vadd.f32 %v1020_v51, %v3988_v25  ;;  %v863_v54 = vpop.f32.mrb[15].mxu1  ;;  %v1022_v2 = vpop.f32.mrb[23].mxu0  ;;  %2360 = vmatmul.mubr.bf16.gmra.mrb[40].mxu0 %v1274_v35  ;;  %v1196_v58 = vmax.f32 %v858_v38, 0.0  ;;  %v1202_v49 = vmax.f32 %v1017_v39, 0.0  ;;  %v3338_v35 = vld [vmem:[%s4452_s6 + $0x1c8] sm:$0xff]  }
 0x4a7   :  { %v864_v52 = vadd.f32 %v863_v54, %v3996_v20  ;;  %v1023_v56 = vadd.f32 %v1022_v2, %v4000_v22  ;;  %3082 = vmatpush3.bf16.msra.mxu0 %v3328_v11  ;;  %2449 = vmatprep.mubr.bf16.mxu0 %v3973_v45  ;;  %v1197_v48 = vmax.f32 %v860_v16, 0.0  ;;  %v1203_v0 = vmax.f32 %v1019_v47, 0.0 }
 0x4a8   :  { %v1212_v60 = vmax.f32 %v862_v53, 0.0  ;;  %v1218_v61 = vmax.f32 %v1021_v55, 0.0  ;;  %3083 = vmatprep.subr.bf16.mxu0 %v3330_v43  ;;  %v554_v45 = vsub.s32 7, %v3583_v14  ;;  %v4054_v38 = vrot.slane %v3958_v18, %v550_v8  ;;  %v3342_v55 = vld [vmem:[%s4452_s6 + $0x1d0] sm:$0xff]  }
 0x4a9   :  { %v1213_v1 = vmax.f32 %v864_v52, 0.0  ;;  %v1219_v3 = vmax.f32 %v1023_v56, 0.0  ;;  %v4061_v16 = vrot.slane %v3947_v9, %v542_v13  ;;  %v3340_v13 = vld [vmem:[%s4452_s6 + $0x188] sm:$0xff]  }
 0x4aa   :  { %v1260_v5 = vpack.c.bf16 %v1212_v60, %v1196_v58  ;;  %v4030_v26 = vpack.c.bf16 %v1218_v61, %v1202_v49  ;;  %v4066_v47 = vrot.slane %v3958_v18, %v554_v45 }
 0x4ab   :  { %v1261_v27 = vpack.c.bf16 %v1213_v1, %v1197_v48  ;;  %v4033_v28 = vpack.c.bf16 %v1219_v3, %v1203_v0  ;;  %3084 = vmatpush3.bf16.msra.mxu0 %v3332_v57  ;;  %v867_v29 = vpop.f32.mrb[16].mxu1  ;;  %v1026_v30 = vpop.f32.mrb[24].mxu0  ;;  %v3344_v48 = vld [vmem:[%s4452_s6 + $0x190] sm:$0xff]  }
 0x4ac   :  { %v868_v23 = vadd.f32 %v867_v29, %v3984_v7  ;;  %v1027_v24 = vadd.f32 %v1026_v30, %v3988_v25  ;;  %v869_v32 = vpop.f32.mrb[17].mxu1  ;;  %v1028_v33 = vpop.f32.mrb[25].mxu0  ;;  %3085 = vmatprep.subr.bf16.mxu0 %v3333_v62  ;;  %v3343_v62 = vld [vmem:[%s4452_s6 + $0x130] sm:$0xff]   ;;  %v3346_v29 = vld [vmem:[%s4452_s6 + $0x1d8] sm:$0xff]  }
 0x4ad   :  { %v870_v10 = vadd.f32 %v869_v32, %v3996_v20  ;;  %v1029_v17 = vadd.f32 %v1028_v33, %v4000_v22  ;;  %v871_v37 = vpop.f32.mrb[18].mxu1  ;;  %v1030_v11 = vpop.f32.mrb[26].mxu0  ;;  %2400 = vmatprep.mubr.bf16.mxu1 %v1261_v27  ;;  %v3345_v27 = vld [vmem:[%s4452_s6 + $0x178] sm:$0xff]  }
 0x4ae   :  { %v872_v39 = vadd.f32 %v871_v37, %v3984_v7  ;;  %v1031_v40 = vadd.f32 %v1030_v11, %v3988_v25  ;;  %v873_v42 = vpop.f32.mrb[19].mxu1  ;;  %v1032_v43 = vpop.f32.mrb[27].mxu0  ;;  %2401 = vmatmul.mubr.bf16.vlgmr.msra.gmra.mrb[44].mxu1 %v1260_v5  ;;  %v3339_v7 = vld [vmem:[%s4452_s6 + $0x128] sm:$0xff]   ;;  %v4079_v25 = vrot.slane %v3947_v9, %v546_v19  ;;  %v1228_v18 = vmax.f32 %v868_v23, 0.0  ;;  %v3348_v37 = vld [vmem:[%s4452_s6 + $0x198] sm:$0xff]  }
 0x4af   :  { %v874_v8 = vadd.f32 %v873_v42, %v3996_v20  ;;  %v1033_v41 = vadd.f32 %v1032_v43, %v4000_v22  ;;  %3086 = vmatpush3.bf16.msra.mxu0 %v3335_v15  ;;  %3106 = vmatpush3.bf16.msra.mxu1 %v3336_v31  ;;  %v1234_v51 = vmax.f32 %v1027_v24, 0.0  ;;  %v3341_v22 = vld [vmem:[%s4452_s6 + $0x170] sm:$0xff]   ;;  %v1229_v54 = vmax.f32 %v870_v10, 0.0  ;;  %v3349_v43 = vld [vmem:[%s4452_s6 + $0x1e0] sm:$0xff]  }
 0x4b0   :  { %v1244_v20 = vmax.f32 %v872_v39, 0.0  ;;  %v1250_v53 = vmax.f32 %v1031_v40, 0.0  ;;  %3087 = vmatprep.subr.bf16.mxu0 %v3337_v34  ;;  %3107 = vmatprep.subr.bf16.mxu1 %v3338_v35  ;;  %v1235_v2 = vmax.f32 %v1029_v17, 0.0  ;;  %v3347_v17 = vld [vmem:[%s4452_s6 + $0x138] sm:$0xff]  }
 0x4b1   :  { %v1245_v52 = vmax.f32 %v874_v8, 0.0  ;;  %v1251_v56 = vmax.f32 %v1033_v41, 0.0  ;;  %v3350_v8 = vld [vmem:[%s4452_s6 + $0x240] sm:$0xff]  }
 0x4b2   :  { %v1276_v19 = vpack.c.bf16 %v1244_v20, %v1228_v18  ;;  %v4087_v57 = vpack.c.bf16 %v1250_v53, %v1234_v51 }
 0x4b3   :  { %v1277_v58 = vpack.c.bf16 %v1245_v52, %v1229_v54  ;;  %v4089_v49 = vpack.c.bf16 %v1251_v56, %v1235_v2  ;;  %3088 = vmatpush3.bf16.msra.mxu0 %v3339_v7  ;;  %3108 = vmatpush3.bf16.msra.mxu1 %v3340_v13  ;;  %v963_v60 = vpop.f32.mrb[20].mxu1  ;;  %v1122_v61 = vpop.f32.mrb[28].mxu0  ;;  %v3351_v2 = vld [vmem:[%s4452_s6 + $0x1a0] sm:$0xff]  }
 0x4b4   :  { %v964_v0 = vadd.f32 %v963_v60, %v4054_v38  ;;  %v1123_v1 = vadd.f32 %v1122_v61, %v4061_v16  ;;  %v965_v3 = vpop.f32.mrb[21].mxu1  ;;  %v1124_v5 = vpop.f32.mrb[29].mxu0  ;;  %3089 = vmatprep.subr.bf16.mxu0 %v3341_v22  ;;  %3109 = vmatprep.subr.bf16.mxu1 %v3342_v55  ;;  %v3352_v60 = vld [vmem:[%s4452_s6 + $0x200] sm:$0xff]   ;;  %v3353_v61 = vld [vmem:[%s4452_s6 + $0x1e8] sm:$0xff]  }
 0x4b5   :  { %v966_v30 = vadd.f32 %v965_v3, %v4066_v47  ;;  %v1125_v15 = vadd.f32 %v1124_v5, %v4079_v25  ;;  %v967_v31 = vpop.f32.mrb[22].mxu1  ;;  %v1126_v23 = vpop.f32.mrb[30].mxu0  ;;  %2408 = vmatprep.mubr.bf16.mxu1 %v1277_v58  ;;  %v3354_v3 = vld [vmem:[%s4452_s6 + $0x248] sm:$0xff]  }
 0x4b6   :  { %v968_v24 = vadd.f32 %v967_v31, %v4054_v38  ;;  %v1127_v32 = vadd.f32 %v1126_v23, %v4061_v16  ;;  %v969_v33 = vpop.f32.mrb[23].mxu1  ;;  %v1128_v34 = vpop.f32.mrb[31].mxu0  ;;  %2409 = vmatmul.mubr.bf16.gmra.mrb[48].mxu1 %v1276_v19  ;;  %v1200_v11 = vmax.f32 %v964_v0, 0.0  ;;  %v1206_v39 = vmax.f32 %v1123_v1, 0.0 }
 0x4b7   :  { %v970_v35 = vadd.f32 %v969_v33, %v4066_v47  ;;  %v1129_v10 = vadd.f32 %v1128_v34, %v4079_v25  ;;  %3090 = vmatpush3.bf16.msra.mxu0 %v3343_v62  ;;  %3110 = vmatpush3.bf16.msra.mxu1 %v3344_v48  ;;  %v1201_v41 = vmax.f32 %v966_v30, 0.0  ;;  %v1207_v7 = vmax.f32 %v1125_v15, 0.0 }
 0x4b8   :  { %v1216_v40 = vmax.f32 %v968_v24, 0.0  ;;  %v1222_v42 = vmax.f32 %v1127_v32, 0.0  ;;  %3091 = vmatprep.subr.bf16.mxu0 %v3345_v27  ;;  %3111 = vmatprep.subr.bf16.mxu1 %v3346_v29  ;;  %v4150_v15 = vrot.slane %v3947_v9, %v3633_v21 }
 0x4b9   :  { %v1217_v13 = vmax.f32 %v970_v35, 0.0  ;;  %v1223_v18 = vmax.f32 %v1129_v10, 0.0 }
 0x4ba   :  { %v4123_v51 = vpack.c.bf16 %v1216_v40, %v1200_v11  ;;  %v4125_v20 = vpack.c.bf16 %v1222_v42, %v1206_v39  ;;  %v3359_v40 = vld [vmem:[%s4452_s6 + $0x1b0] sm:$0xff]  }
 0x4bb   :  { %v1265_v53 = vpack.c.bf16 %v1217_v13, %v1201_v41  ;;  %v4127_v22 = vpack.c.bf16 %v1223_v18, %v1207_v7  ;;  %3092 = vmatpush3.bf16.msra.mxu0 %v3347_v17  ;;  %3112 = vmatpush3.bf16.msra.mxu1 %v3348_v37  ;;  %v973_v55 = vpop.f32.mrb[24].mxu1  ;;  %v1132_v54 = vpop.f32.mrb[32].mxu0  ;;  %v3361_v41 = vld [vmem:[%s4452_s6 + $0x1f8] sm:$0xff]  }
 0x4bc   :  { %v974_v52 = vadd.f32 %v973_v55, %v4054_v38  ;;  %v1133_v56 = vadd.f32 %v1132_v54, %v4061_v16  ;;  %v975_v19 = vpop.f32.mrb[25].mxu1  ;;  %v1134_v58 = vpop.f32.mrb[33].mxu0  ;;  %3113 = vmatprep.subr.bf16.mxu1 %v3349_v43  ;;  %3133 = vmatprep.subr.bf16.mxu0 %v3350_v8  ;;  %v3360_v8 = vld [vmem:[%s4452_s6 + $0x210] sm:$0xff]   ;;  %v3362_v18 = vld [vmem:[%s4452_s6 + $0x258] sm:$0xff]  }
 0x4bd   :  { %v976_v62 = vadd.f32 %v975_v19, %v4066_v47  ;;  %v1135_v48 = vadd.f32 %v1134_v58, %v4079_v25  ;;  %v977_v0 = vpop.f32.mrb[26].mxu1  ;;  %v1136_v1 = vpop.f32.mrb[34].mxu0  ;;  %2498 = vmatprep.mubr.bf16.mxu1 %v1265_v53  ;;  %v3364_v19 = vld [vmem:[%s4452_s6 + $0x218] sm:$0xff]  }
 0x4be   :  { %v978_v5 = vadd.f32 %v977_v0, %v4054_v38  ;;  %v1137_v27 = vadd.f32 %v1136_v1, %v4061_v16  ;;  %2450 = vmatmul.mubr.bf16.vlgmr.msra.gmra.mrb[44].mxu0 %v3971_v46  ;;  %v979_v29 = vpop.f32.mrb[27].mxu1  ;;  %v1138_v30 = vpop.f32.mrb[35].mxu0  ;;  %v3355_v38 = vld [vmem:[%s4452_s6 + $0x1a8] sm:$0xff]   ;;  %v4161_v46 = vrot.slane %v3947_v9, %v538_v44  ;;  %v1232_v16 = vmax.f32 %v974_v52, 0.0  ;;  %v3358_v44 = vld [vmem:[%s4452_s6 + $0x250] sm:$0xff]   ;;  %v3368_v0 = vld [vmem:[%s4452_s6 + $0x280] sm:$0xff]  }
 0x4bf   :  { %v980_v31 = vadd.f32 %v979_v29, %v4066_v47  ;;  %v1139_v23 = vadd.f32 %v1138_v30, %v4079_v25  ;;  %2457 = vmatprep.mubr.bf16.mxu0 %v4007_v4  ;;  %3114 = vmatpush3.bf16.msra.mxu1 %v3351_v2  ;;  %v1238_v24 = vmax.f32 %v1133_v56, 0.0  ;;  %v3356_v4 = vld [vmem:[%s4452_s6 + $0x208] sm:$0xff]   ;;  %v3357_v47 = vld [vmem:[%s4452_s6 + $0x1f0] sm:$0xff]   ;;  %v1233_v25 = vmax.f32 %v976_v62, 0.0  ;;  %v3363_v2 = vld [vmem:[%s4452_s6 + $0x1b8] sm:$0xff]  }
 0x4c0   :  { %v1248_v21 = vmax.f32 %v978_v5, 0.0  ;;  %v1254_v32 = vmax.f32 %v1137_v27, 0.0  ;;  %3134 = vmatpush3.bf16.msra.mxu0 %v3352_v60  ;;  %3115 = vmatprep.subr.bf16.mxu1 %v3353_v61  ;;  %v1239_v33 = vmax.f32 %v1135_v48, 0.0  ;;  %v3367_v5 = vld [vmem:[%s4452_s6 + $0x220] sm:$0xff]   ;;  %v3370_v27 = vld [vmem:[%s4452_s6 + $0x2c8] sm:$0xff]  }
 0x4c1   :  { %v1249_v34 = vmax.f32 %v980_v31, 0.0  ;;  %v1255_v35 = vmax.f32 %v1139_v23, 0.0  ;;  %3135 = vmatprep.subr.bf16.mxu0 %v3354_v3  ;;  %v3369_v31 = vld [vmem:[%s4452_s6 + $0x268] sm:$0xff]  }
 0x4c2   :  { %v4172_v10 = vpack.c.bf16 %v1248_v21, %v1232_v16  ;;  %v4174_v17 = vpack.c.bf16 %v1254_v32, %v1238_v24  ;;  %v3372_v24 = vld [vmem:[%s4452_s6 + $0x288] sm:$0xff]  }
 0x4c3   :  { %v1281_v37 = vpack.c.bf16 %v1249_v34, %v1233_v25  ;;  %v4176_v11 = vpack.c.bf16 %v1255_v35, %v1239_v33  ;;  %3116 = vmatpush3.bf16.msra.mxu1 %v3355_v38  ;;  %v1069_v39 = vpop.f32.mrb[28].mxu1  ;;  %v3373_v25 = vld [vmem:[%s4452_s6 + $0x270] sm:$0xff]  }
 0x4c4   :  { %3136 = vmatpush3.bf16.msra.mxu0 %v3356_v4  ;;  %v1070_v42 = vadd.f32 %v1069_v39, %v4150_v15  ;;  %v1071_v43 = vpop.f32.mrb[29].mxu1  ;;  %3117 = vmatprep.subr.bf16.mxu1 %v3357_v47  ;;  %v3371_v4 = vld [vmem:[%s4452_s6 + $0x228] sm:$0xff]   ;;  %v587_v47 = vrot.slane %v3947_v9, %v554_v45  ;;  %v3375_v9 = vld [vmem:[%s4452_s6 + $0x230] sm:$0xff]   ;;  %v3378_v45 = vld [vmem:[%s4452_s6 + $0x2d8] sm:$0xff]  }
 0x4c5   :  { %v1072_v7 = vadd.f32 %v1071_v43, %v4161_v46  ;;  %v1073_v13 = vpop.f32.mrb[30].mxu1  ;;  %3137 = vmatprep.subr.bf16.mxu0 %v3358_v44  ;;  %v3376_v44 = vld [vmem:[%s4452_s6 + $0x290] sm:$0xff]  }
 0x4c6   :  { %v1074_v53 = vadd.f32 %v1073_v13, %v4150_v15  ;;  %2458 = vmatmul.mubr.bf16.gmra.mrb[48].mxu0 %v4005_v36  ;;  %v1075_v55 = vpop.f32.mrb[31].mxu1  ;;  %v1204_v52 = vmax.f32 %v1070_v42, 0.0  ;;  %v3366_v36 = vld [vmem:[%s4452_s6 + $0x2c0] sm:$0xff]   ;;  %v3377_v42 = vld [vmem:[%s4452_s6 + $0x278] sm:$0xff]  }
 0x4c7   :  { %v1076_v54 = vadd.f32 %v1075_v55, %v4161_v46  ;;  %3118 = vmatpush3.bf16.msra.mxu1 %v3359_v40  ;;  %2547 = vmatprep.mubr.bf16.mxu0 %v4033_v28  ;;  %v1205_v58 = vmax.f32 %v1072_v7, 0.0  ;;  %v3365_v28 = vld [vmem:[%s4452_s6 + $0x260] sm:$0xff]   ;;  %v3380_v7 = vld [vmem:[%s4452_s6 + $0x298] sm:$0xff]  }
 0x4c8   :  { %v1220_v56 = vmax.f32 %v1074_v53, 0.0  ;;  %3138 = vmatpush3.bf16.msra.mxu0 %v3360_v8  ;;  %3119 = vmatprep.subr.bf16.mxu1 %v3361_v41  ;;  %v3379_v53 = vld [vmem:[%s4452_s6 + $0x238] sm:$0xff]  }
 0x4c9   :  { %v1221_v60 = vmax.f32 %v1076_v54, 0.0  ;;  %3139 = vmatprep.subr.bf16.mxu0 %v3362_v18 }
 0x4ca   :  { %v4208_v61 = vpack.c.bf16 %v1220_v56, %v1204_v52 }
 0x4cb   :  { %v1269_v62 = vpack.c.bf16 %v1221_v60, %v1205_v58  ;;  %3120 = vmatpush3.bf16.msra.mxu1 %v3363_v2  ;;  %v1079_v48 = vpop.f32.mrb[32].mxu1  ;;  %v3382_v2 = vld [vmem:[%s4452_s6 + $0x340] sm:$0xff]  }
 0x4cc   :  { %3140 = vmatpush3.bf16.msra.mxu0 %v3364_v19  ;;  %v1080_v1 = vadd.f32 %v1079_v48, %v4150_v15  ;;  %v1081_v3 = vpop.f32.mrb[33].mxu1  ;;  %3161 = vmatprep.subr.bf16.mxu1 %v3366_v36  ;;  %v3383_v36 = vld [vmem:[%s4452_s6 + $0x2a0] sm:$0xff]  }
 0x4cd   :  { %v1082_v29 = vadd.f32 %v1081_v3, %v4161_v46  ;;  %v1083_v30 = vpop.f32.mrb[34].mxu1  ;;  %3141 = vmatprep.subr.bf16.mxu0 %v3365_v28  ;;  %v3384_v28 = vld [vmem:[%s4452_s6 + $0x300] sm:$0xff]  }
 0x4ce   :  { %v1084_v23 = vadd.f32 %v1083_v30, %v4150_v15  ;;  %2499 = vmatmul.mubr.bf16.vlgmr.msra.gmra.mrb[52].mxu1 %v4123_v51  ;;  %v1085_v38 = vpop.f32.mrb[35].mxu1  ;;  %v1236_v21 = vmax.f32 %v1080_v1, 0.0  ;;  %v3374_v51 = vld [vmem:[%s4452_s6 + $0x2d0] sm:$0xff]   ;;  %v3386_v1 = vld [vmem:[%s4452_s6 + $0x348] sm:$0xff]  }
 0x4cf   :  { %v1086_v16 = vadd.f32 %v1085_v38, %v4161_v46  ;;  %2506 = vmatprep.mubr.bf16.mxu1 %v1281_v37  ;;  %3162 = vmatpush3.bf16.msra.mxu1 %v3368_v0  ;;  %v1237_v15 = vmax.f32 %v1082_v29, 0.0  ;;  %v3385_v0 = vld [vmem:[%s4452_s6 + $0x2e8] sm:$0xff]  }
 0x4d0   :  { %v1252_v32 = vmax.f32 %v1084_v23, 0.0  ;;  %3142 = vmatpush3.bf16.msra.mxu0 %v3367_v5  ;;  %3163 = vmatprep.subr.bf16.mxu1 %v3370_v27  ;;  %v3387_v29 = vld [vmem:[%s4452_s6 + $0x2a8] sm:$0xff]  }
 0x4d1   :  { %v1253_v46 = vmax.f32 %v1086_v16, 0.0  ;;  %3143 = vmatprep.subr.bf16.mxu0 %v3369_v31  ;;  %v3388_v23 = vld [vmem:[%s4452_s6 + $0x308] sm:$0xff]   ;;  %v3390_v16 = vld [vmem:[%s4452_s6 + $0x350] sm:$0xff]  }
 0x4d2   :  { %v4242_v33 = vpack.c.bf16 %v1252_v32, %v1236_v21  ;;  %v3391_v21 = vld [vmem:[%s4452_s6 + $0x2b0] sm:$0xff]  }
 0x4d3   :  { %v4244_v34 = vpack.c.bf16 %v1253_v46, %v1237_v15  ;;  %3164 = vmatpush3.bf16.msra.mxu1 %v3372_v24  ;;  %v1175_v35 = vpop.f32.mrb[36].mxu1  ;;  %v3392_v32 = vld [vmem:[%s4452_s6 + $0x310] sm:$0xff]   ;;  %v3395_v15 = vld [vmem:[%s4452_s6 + $0x2b8] sm:$0xff]  }
 0x4d4   :  { %3144 = vmatpush3.bf16.msra.mxu0 %v3371_v4  ;;  %v1176_v37 = vadd.f32 %v1175_v35, %v3952_v12  ;;  %v1177_v14 = vpop.f32.mrb[37].mxu1  ;;  %3165 = vmatprep.subr.bf16.mxu1 %v3374_v51  ;;  %v3393_v4 = vld [vmem:[%s4452_s6 + $0x2f8] sm:$0xff]   ;;  %v3402_v35 = vld [vmem:[%s4452_s6 + $0x3c8] sm:$0xff]  }
 0x4d5   :  { %v1178_v39 = vadd.f32 %v1177_v14, %v587_v47  ;;  %v1179_v40 = vpop.f32.mrb[38].mxu1  ;;  %3145 = vmatprep.subr.bf16.mxu0 %v3373_v25  ;;  %v3394_v51 = vld [vmem:[%s4452_s6 + $0x358] sm:$0xff]   ;;  %v3400_v25 = vld [vmem:[%s4452_s6 + $0x380] sm:$0xff]   ;;  %v3403_v14 = vld [vmem:[%s4452_s6 + $0x328] sm:$0xff]  }
 0x4d6   :  { %v1180_v43 = vadd.f32 %v1179_v40, %v3952_v12  ;;  %2507 = vmatmul.mubr.bf16.gmra.mrb[56].mxu1 %v4172_v10  ;;  %v1181_v8 = vpop.f32.mrb[39].mxu1  ;;  %v1208_v13 = vmax.f32 %v1176_v37, 0.0  ;;  %v3381_v10 = vld [vmem:[%s4452_s6 + $0x2e0] sm:$0xff]   ;;  %v3396_v46 = vld [vmem:[%s4452_s6 + $0x318] sm:$0xff]   ;;  %v3404_v37 = vld [vmem:[%s4452_s6 + $0x388] sm:$0xff]  }
 0x4d7   :  { %v1182_v41 = vadd.f32 %v1181_v8, %v587_v47  ;;  %3166 = vmatpush3.bf16.msra.mxu1 %v3376_v44  ;;  %2596 = vmatprep.mubr.bf16.mxu1 %v1269_v62  ;;  %v1209_v55 = vmax.f32 %v1178_v39, 0.0  ;;  %v3401_v44 = vld [vmem:[%s4452_s6 + $0x368] sm:$0xff]   ;;  %v3410_v39 = vld [vmem:[%s4452_s6 + $0x3d8] sm:$0xff]   ;;  %v3413_v8 = vld [vmem:[%s4452_s6 + $0x3e0] sm:$0xff]  }
 0x4d8   :  { %v1224_v18 = vmax.f32 %v1180_v43, 0.0  ;;  %3146 = vmatpush3.bf16.msra.mxu0 %v3375_v9  ;;  %3167 = vmatprep.subr.bf16.mxu1 %v3378_v45  ;;  %v3406_v9 = vld [vmem:[%s4452_s6 + $0x3d0] sm:$0xff]   ;;  %v3409_v40 = vld [vmem:[%s4452_s6 + $0x378] sm:$0xff]  }
 0x4d9   :  { %v1225_v54 = vmax.f32 %v1182_v41, 0.0  ;;  %3147 = vmatprep.subr.bf16.mxu0 %v3377_v42  ;;  %v3407_v45 = vld [vmem:[%s4452_s6 + $0x330] sm:$0xff]   ;;  %v3412_v42 = vld [vmem:[%s4452_s6 + $0x398] sm:$0xff]   ;;  %v3415_v41 = vld [vmem:[%s4452_s6 + $0x3e8] sm:$0xff]  }
 0x4da   :  { %v4273_v52 = vpack.c.bf16 %v1224_v18, %v1208_v13  ;;  %v3411_v43 = vld [vmem:[%s4452_s6 + $0x338] sm:$0xff]   ;;  %v3417_v13 = vld [vmem:[%s4452_s6 + $0x3f0] sm:$0xff]  }
 0x4db   :  { %v4275_v56 = vpack.c.bf16 %v1225_v54, %v1209_v55  ;;  %3168 = vmatpush3.bf16.msra.mxu1 %v3380_v7  ;;  %v1185_v19 = vpop.f32.mrb[40].mxu1  ;;  %v3416_v7 = vld [vmem:[%s4452_s6 + $0x3a8] sm:$0xff]   ;;  %v3418_v18 = vld [vmem:[%s4452_s6 + $0x3b0] sm:$0xff]  }
 0x4dc   :  { %3148 = vmatpush3.bf16.msra.mxu0 %v3379_v53  ;;  %v1186_v58 = vadd.f32 %v1185_v19, %v3952_v12  ;;  %v1187_v60 = vpop.f32.mrb[41].mxu1  ;;  %3169 = vmatprep.subr.bf16.mxu1 %v3381_v10 }
 0x4dd   :  { %v1188_v62 = vadd.f32 %v1187_v60, %v587_v47  ;;  %v1189_v48 = vpop.f32.mrb[42].mxu1  ;;  %3189 = vmatprep.subr.bf16.mxu0 %v3382_v2 }
 0x4de   :  { %v1190_v3 = vadd.f32 %v1189_v48, %v3952_v12  ;;  %v1191_v5 = vpop.f32.mrb[43].mxu1  ;;  %v1240_v30 = vmax.f32 %v1186_v58, 0.0  ;;  %v3389_v12 = vld [vmem:[%s4452_s6 + $0x2f0] sm:$0xff]  }
 0x4df   :  { %2548 = vmatmul.mubr.bf16.vlgmr.msra.gmra.mrb[52].mxu0 %v4030_v26  ;;  %v1192_v27 = vadd.f32 %v1191_v5, %v587_v47  ;;  %3170 = vmatpush3.bf16.msra.mxu1 %v3383_v36  ;;  %v1241_v26 = vmax.f32 %v1188_v62, 0.0  ;;  %v3398_v47 = vld [vmem:[%s4452_s6 + $0x3c0] sm:$0xff]  }
 0x4e0   :  { %v1256_v31 = vmax.f32 %v1190_v3, 0.0  ;;  %2555 = vmatprep.mubr.bf16.mxu0 %v4089_v49  ;;  %3190 = vmatpush3.bf16.msra.mxu0 %v3384_v28 }
 0x4e1   :  { %v1257_v38 = vmax.f32 %v1192_v27, 0.0  ;;  %3171 = vmatprep.subr.bf16.mxu1 %v3385_v0  ;;  %3191 = vmatprep.subr.bf16.mxu0 %v3386_v1 }
 0x4e2   :  { %v4305_v24 = vpack.c.bf16 %v1256_v31, %v1240_v30 }
 0x4e3   :  { %v4307_v49 = vpack.c.bf16 %v1257_v38, %v1241_v26  ;;  %3172 = vmatpush3.bf16.msra.mxu1 %v3387_v29 }
 0x4e4   :  { %3192 = vmatpush3.bf16.msra.mxu0 %v3388_v23  ;;  %3173 = vmatprep.subr.bf16.mxu1 %v3389_v12 }
 0x4e5   :  { %3193 = vmatprep.subr.bf16.mxu0 %v3390_v16 }
 0x4e7   :  { %2556 = vmatmul.mubr.bf16.gmra.mrb[56].mxu0 %v4087_v57  ;;  %3174 = vmatpush3.bf16.msra.mxu1 %v3391_v21  ;;  %v3397_v57 = vld [vmem:[%s4452_s6 + $0x360] sm:$0xff]  }
 0x4e8   :  { %3194 = vmatpush3.bf16.msra.mxu0 %v3392_v32  ;;  %2645 = vmatprep.mubr.bf16.mxu0 %v4127_v22  ;;  %v3399_v22 = vld [vmem:[%s4452_s6 + $0x320] sm:$0xff]  }
 0x4e9   :  { %3175 = vmatprep.subr.bf16.mxu1 %v3393_v4  ;;  %3195 = vmatprep.subr.bf16.mxu0 %v3394_v51 }
 0x4eb   :  { %3176 = vmatpush3.bf16.msra.mxu1 %v3395_v15 }
 0x4ec   :  { %3196 = vmatpush3.bf16.msra.mxu0 %v3396_v46  ;;  %3217 = vmatprep.subr.bf16.mxu1 %v3398_v47 }
 0x4ed   :  { %3197 = vmatprep.subr.bf16.mxu0 %v3397_v57 }
 0x4ee   :  { %2597 = vmatmul.mubr.bf16.vlgmr.msra.gmra.mrb[60].mxu1 %v4208_v61  ;;  %v3405_v61 = vld [vmem:[%s4452_s6 + $0x370] sm:$0xff]  }
 0x4ef   :  { %2604 = vmatprep.mubr.bf16.mxu1 %v4244_v34  ;;  %3218 = vmatpush3.bf16.msra.mxu1 %v3400_v25  ;;  %v3408_v34 = vld [vmem:[%s4452_s6 + $0x390] sm:$0xff]  }
 0x4f0   :  { %3198 = vmatpush3.bf16.msra.mxu0 %v3399_v22  ;;  %3219 = vmatprep.subr.bf16.mxu1 %v3402_v35 }
 0x4f1   :  { %3199 = vmatprep.subr.bf16.mxu0 %v3401_v44 }
 0x4f3   :  { %3220 = vmatpush3.bf16.msra.mxu1 %v3404_v37 }
 0x4f4   :  { %3200 = vmatpush3.bf16.msra.mxu0 %v3403_v14  ;;  %3221 = vmatprep.subr.bf16.mxu1 %v3406_v9 }
 0x4f5   :  { %3201 = vmatprep.subr.bf16.mxu0 %v3405_v61 }
 0x4f6   :  { %2605 = vmatmul.mubr.bf16.gmra.mrb[64].mxu1 %v4242_v33  ;;  %v3414_v33 = vld [vmem:[%s4452_s6 + $0x3a0] sm:$0xff]  }
 0x4f7   :  { %3222 = vmatpush3.bf16.msra.mxu1 %v3408_v34  ;;  %2694 = vmatprep.mubr.bf16.mxu1 %v4275_v56 }
 0x4f8   :  { %3202 = vmatpush3.bf16.msra.mxu0 %v3407_v45  ;;  %3223 = vmatprep.subr.bf16.mxu1 %v3410_v39 }
 0x4f9   :  { %3203 = vmatprep.subr.bf16.mxu0 %v3409_v40 }
 0x4fb   :  { %3224 = vmatpush3.bf16.msra.mxu1 %v3412_v42 }
 0x4fc   :  { %3204 = vmatpush3.bf16.msra.mxu0 %v3411_v43  ;;  %3225 = vmatprep.subr.bf16.mxu1 %v3413_v8 }
 0x4ff   :  { %2646 = vmatmul.mubr.bf16.vlgmr.msra.gmra.mrb[60].mxu0 %v4125_v20  ;;  %3226 = vmatpush3.bf16.msra.mxu1 %v3414_v33  ;;  %v3419_v20 = vld [vmem:[%s4452_s6 + $0x3f8] sm:$0xff]  }
 0x500   :  { %2653 = vmatprep.mubr.bf16.mxu0 %v4176_v11  ;;  %3227 = vmatprep.subr.bf16.mxu1 %v3415_v41  ;;  %v3420_v11 = vld [vmem:[%s4452_s6 + $0x3b8] sm:$0xff]  }
 0x503   :  { %3228 = vmatpush3.bf16.msra.mxu1 %v3416_v7 }
 0x504   :  { %3229 = vmatprep.subr.bf16.mxu1 %v3417_v13 }
 0x507   :  { %2654 = vmatmul.mubr.bf16.gmra.mrb[64].mxu0 %v4174_v17  ;;  %3230 = vmatpush3.bf16.msra.mxu1 %v3418_v18 }
 0x508   :  { %3231 = vmatprep.subr.bf16.mxu1 %v3419_v20 }
 0x50b   :  { %3232 = vmatpush3.bf16.msra.mxu1 %v3420_v11 }
 0x50e   :  { %2695 = vmatmul.mubr.bf16.vlgmr.msra.gmra.mrb[68].mxu1 %v4273_v52  ;;  %v2876_v52 = vld [vmem:[%s4453_s7 + $0x1] ss:$0 sm:$0xff] }
 0x50f   :  { %2702 = vmatprep.mubr.bf16.mxu1 %v4307_v49 }
 0x516   :  { %2703 = vmatmul.mubr.bf16.gmra.mrb[72].mxu1 %v4305_v24 }
 0x571   :  { %v3037_v53 = vpop.f32.mrb[36].mxu0 }
 0x572   :  { %v3038_v10 = vpop.f32.mrb[37].mxu0 }
 0x573   :  { %v3039_v55 = vadd.f32 %v3038_v10, %v3037_v53  ;;  %v3040_v54 = vpop.f32.mrb[38].mxu0 }
 0x574   :  { %v3041_v2 = vpop.f32.mrb[39].mxu0 }
 0x575   :  { %v3042_v56 = vadd.f32 %v3041_v2, %v3040_v54  ;;  %v2354_v0 = vadd.f32 %v3039_v55, %v2876_v52 }
 0x577   :  { %v2357_v27 = vadd.f32 %v3042_v56, %v2876_v52 }
 0x579   :  { %v3043_v17 = vpop.f32.mrb[40].mxu0 }
 0x57a   :  { %v3044_v19 = vpop.f32.mrb[41].mxu0 }
 0x57b   :  { %v3045_v36 = vadd.f32 %v3044_v19, %v3043_v17  ;;  %v3046_v58 = vpop.f32.mrb[42].mxu0 }
 0x57c   :  { %v3047_v60 = vpop.f32.mrb[43].mxu0 }
 0x57d   :  { %v3048_v28 = vadd.f32 %v3047_v60, %v3046_v58  ;;  %v2362_v26 = vadd.f32 %v3045_v36, %v2876_v52 }
 0x57f   :  { %v2365_v49 = vadd.f32 %v3048_v28, %v2876_v52 }
 0x581   :  { %v3065_v62 = vpop.f32.mrb[44].mxu1 }
 0x582   :  { %v3066_v48 = vpop.f32.mrb[45].mxu1 }
 0x583   :  { %v3067_v1 = vadd.f32 %v3066_v48, %v3065_v62  ;;  %v3068_v3 = vpop.f32.mrb[46].mxu1 }
 0x584   :  { %v3069_v5 = vpop.f32.mrb[47].mxu1 }
 0x585   :  { %v2403_v29 = vadd.f32 %v3067_v1, %v2354_v0  ;;  %v3070_v30 = vadd.f32 %v3069_v5, %v3068_v3 }
 0x587   :  { %v2406_v31 = vadd.f32 %v3070_v30, %v2357_v27 }
 0x589   :  { %v3071_v23 = vpop.f32.mrb[48].mxu1 }
 0x58a   :  { %v3072_v12 = vpop.f32.mrb[49].mxu1 }
 0x58b   :  { %v3073_v38 = vadd.f32 %v3072_v12, %v3071_v23  ;;  %v3074_v16 = vpop.f32.mrb[50].mxu1 }
 0x58c   :  { %v3075_v24 = vpop.f32.mrb[51].mxu1 }
 0x58d   :  { %v2411_v21 = vadd.f32 %v3073_v38, %v2362_v26  ;;  %v3076_v32 = vadd.f32 %v3075_v24, %v3074_v16 }
 0x58f   :  { %v2414_v4 = vadd.f32 %v3076_v32, %v2365_v49 }
 0x591   :  { %v3093_v51 = vpop.f32.mrb[44].mxu0 }
 0x592   :  { %v3094_v15 = vpop.f32.mrb[45].mxu0 }
 0x593   :  { %v3095_v46 = vadd.f32 %v3094_v15, %v3093_v51  ;;  %v3096_v47 = vpop.f32.mrb[46].mxu0 }
 0x594   :  { %v3097_v57 = vpop.f32.mrb[47].mxu0 }
 0x595   :  { %v2452_v25 = vadd.f32 %v3095_v46, %v2403_v29  ;;  %v3098_v22 = vadd.f32 %v3097_v57, %v3096_v47 }
 0x597   :  { %v2455_v35 = vadd.f32 %v3098_v22, %v2406_v31 }
 0x599   :  { %v3099_v44 = vpop.f32.mrb[48].mxu0 }
 0x59a   :  { %v3100_v37 = vpop.f32.mrb[49].mxu0 }
 0x59b   :  { %v3101_v14 = vadd.f32 %v3100_v37, %v3099_v44  ;;  %v3102_v9 = vpop.f32.mrb[50].mxu0 }
 0x59c   :  { %v3103_v61 = vpop.f32.mrb[51].mxu0 }
 0x59d   :  { %v2460_v34 = vadd.f32 %v3101_v14, %v2411_v21  ;;  %v3104_v45 = vadd.f32 %v3103_v61, %v3102_v9 }
 0x59f   :  { %v2463_v39 = vadd.f32 %v3104_v45, %v2414_v4 }
 0x5a1   :  { %v3121_v40 = vpop.f32.mrb[52].mxu1 }
 0x5a2   :  { %v3122_v42 = vpop.f32.mrb[53].mxu1 }
 0x5a3   :  { %v3123_v43 = vadd.f32 %v3122_v42, %v3121_v40  ;;  %v3124_v8 = vpop.f32.mrb[54].mxu1 }
 0x5a4   :  { %v3125_v33 = vpop.f32.mrb[55].mxu1 }
 0x5a5   :  { %v2501_v41 = vadd.f32 %v3123_v43, %v2452_v25  ;;  %v3126_v7 = vadd.f32 %v3125_v33, %v3124_v8 }
 0x5a7   :  { %v2504_v13 = vadd.f32 %v3126_v7, %v2455_v35 }
 0x5a9   :  { %v3127_v18 = vpop.f32.mrb[56].mxu1 }
 0x5aa   :  { %v3128_v20 = vpop.f32.mrb[57].mxu1 }
 0x5ab   :  { %v3129_v11 = vadd.f32 %v3128_v20, %v3127_v18  ;;  %v3130_v53 = vpop.f32.mrb[58].mxu1 }
 0x5ac   :  { %v3131_v10 = vpop.f32.mrb[59].mxu1 }
 0x5ad   :  { %v2509_v55 = vadd.f32 %v3129_v11, %v2460_v34  ;;  %v3132_v54 = vadd.f32 %v3131_v10, %v3130_v53 }
 0x5af   :  { %v2512_v2 = vadd.f32 %v3132_v54, %v2463_v39 }
 0x5b2   :  { %v3149_v56 = vpop.f32.mrb[52].mxu0 }
 0x5b3   :  { %v3150_v17 = vpop.f32.mrb[53].mxu0 }
 0x5b4   :  { %v3151_v19 = vadd.f32 %v3150_v17, %v3149_v56  ;;  %v3152_v36 = vpop.f32.mrb[54].mxu0 }
 0x5b5   :  { %v3153_v58 = vpop.f32.mrb[55].mxu0 }
 0x5b6   :  { %v2550_v60 = vadd.f32 %v3151_v19, %v2501_v41  ;;  %v3154_v28 = vadd.f32 %v3153_v58, %v3152_v36 }
 0x5b8   :  { %v2553_v52 = vadd.f32 %v3154_v28, %v2504_v13 }
 0x5ba   :  { %v3155_v62 = vpop.f32.mrb[56].mxu0 }
 0x5bb   :  { %v3156_v48 = vpop.f32.mrb[57].mxu0 }
 0x5bc   :  { %v3157_v0 = vadd.f32 %v3156_v48, %v3155_v62  ;;  %v3158_v1 = vpop.f32.mrb[58].mxu0 }
 0x5bd   :  { %v3159_v3 = vpop.f32.mrb[59].mxu0 }
 0x5be   :  { %v2558_v5 = vadd.f32 %v3157_v0, %v2509_v55  ;;  %v3160_v27 = vadd.f32 %v3159_v3, %v3158_v1 }
 0x5c0   :  { %v2561_v29 = vadd.f32 %v3160_v27, %v2512_v2 }
 0x5c1   :  { %v3177_v30 = vpop.f32.mrb[60].mxu1 }
 0x5c2   :  { %v3178_v31 = vpop.f32.mrb[61].mxu1 }
 0x5c3   :  { %v3179_v23 = vadd.f32 %v3178_v31, %v3177_v30  ;;  %v3180_v12 = vpop.f32.mrb[62].mxu1 }
 0x5c4   :  { %v3181_v26 = vpop.f32.mrb[63].mxu1 }
 0x5c5   :  { %v2599_v38 = vadd.f32 %v3179_v23, %v2550_v60  ;;  %v3182_v16 = vadd.f32 %v3181_v26, %v3180_v12 }
 0x5c7   :  { %v2602_v24 = vadd.f32 %v3182_v16, %v2553_v52 }
 0x5c9   :  { %v3183_v49 = vpop.f32.mrb[64].mxu1 }
 0x5ca   :  { %v3184_v21 = vpop.f32.mrb[65].mxu1 }
 0x5cb   :  { %v3185_v32 = vadd.f32 %v3184_v21, %v3183_v49  ;;  %v3186_v4 = vpop.f32.mrb[66].mxu1 }
 0x5cc   :  { %v3187_v51 = vpop.f32.mrb[67].mxu1 }
 0x5cd   :  { %v2607_v15 = vadd.f32 %v3185_v32, %v2558_v5  ;;  %v3188_v46 = vadd.f32 %v3187_v51, %v3186_v4 }
 0x5cf   :  { %v2610_v47 = vadd.f32 %v3188_v46, %v2561_v29 }
 0x5d2   :  { %v3205_v57 = vpop.f32.mrb[60].mxu0 }
 0x5d3   :  { %v3206_v25 = vpop.f32.mrb[61].mxu0 }
 0x5d4   :  { %v3207_v22 = vadd.f32 %v3206_v25, %v3205_v57  ;;  %v3208_v35 = vpop.f32.mrb[62].mxu0 }
 0x5d5   :  { %v3209_v44 = vpop.f32.mrb[63].mxu0 }
 0x5d6   :  { %v2648_v37 = vadd.f32 %v3207_v22, %v2599_v38  ;;  %v3210_v14 = vadd.f32 %v3209_v44, %v3208_v35 }
 0x5d8   :  { %v2651_v9 = vadd.f32 %v3210_v14, %v2602_v24 }
 0x5da   :  { %v3211_v61 = vpop.f32.mrb[64].mxu0 }
 0x5db   :  { %v3212_v34 = vpop.f32.mrb[65].mxu0 }
 0x5dc   :  { %v3213_v45 = vadd.f32 %v3212_v34, %v3211_v61  ;;  %v3214_v39 = vpop.f32.mrb[66].mxu0 }
 0x5dd   :  { %v3215_v40 = vpop.f32.mrb[67].mxu0 }
 0x5de   :  { %v2656_v42 = vadd.f32 %v3213_v45, %v2607_v15  ;;  %v3216_v43 = vadd.f32 %v3215_v40, %v3214_v39  ;;  %v3005_v39 = vld [vmem:[%s4453_s7 + $0x4] ss:$0 sm:$0xff] }
 0x5e0   :  { %v2659_v8 = vadd.f32 %v3216_v43, %v2610_v47 }
 0x5e1   :  { %v3233_v33 = vpop.f32.mrb[68].mxu1 }
 0x5e2   :  { %v3234_v41 = vpop.f32.mrb[69].mxu1 }
 0x5e3   :  { %v3235_v7 = vadd.f32 %v3234_v41, %v3233_v33  ;;  %v3236_v13 = vpop.f32.mrb[70].mxu1  ;;  %v3006_v41 = vld [vmem:[%s4453_s7 + $0x5] ss:$0 sm:$0xff]  ;;  %s3461_s7 = scalar_lea.vmem %s2797_s0, 256 }
 0x5e4   :  { %v3237_v18 = vpop.f32.mrb[71].mxu1  ;;  %p3462_p0 = scmp.ne.s32.totalorder %s2797_s0, %s3461_s7  ;;  %p3467_p2 = scmp.lt.s32.totalorder %s3461_s7, %s3461_s7 }
 0x5e5   :  { %v2697_v20 = vadd.f32 %v3235_v7, %v2648_v37  ;;  %v3238_v11 = vadd.f32 %v3237_v18, %v3236_v13 }
 0x5e6   :  { %p3468_p3 = por %p3467_p2, %p3466_p1 }
 0x5e7   :  { %v2700_v53 = vadd.f32 %v3238_v11, %v2651_v9  ;;  %v2711_v10 = vadd.f32 %v2697_v20, %v3723_v6 }
 0x5e8   :  { %p3469_p4 = pnand %p3468_p3, %p3462_p0 }
 0x5e9   :  { %v3239_v55 = vpop.f32.mrb[72].mxu1  ;;  %v2717_v54 = vsel %vm94_vm0, %v2711_v10, 0.0  ;;  %v2712_v2 = vadd.f32 %v2700_v53, %v3725_v50 }
 0x5ea   :  { %v3240_v56 = vpop.f32.mrb[73].mxu1  ;;  %2718 = vadd.xlane.f32.xlu0 %v2717_v54 }
 0x5eb   :  { %v3241_v17 = vadd.f32 %v3240_v56, %v3239_v55  ;;  %v3242_v19 = vpop.f32.mrb[74].mxu1  ;;  %v2720_v36 = vsel %vm94_vm0, %v2712_v2, 0.0 }
 0x5ec   :  { %v3243_v58 = vpop.f32.mrb[75].mxu1  ;;  %2721 = vadd.xlane.f32.xlu1 %v2720_v36 }
 0x5ed   :  { %v2705_v60 = vadd.f32 %v3241_v17, %v2656_v42  ;;  %v3244_v28 = vadd.f32 %v3243_v58, %v3242_v19 }
 0x5ef   :  { %v2708_v52 = vadd.f32 %v3244_v28, %v2659_v8  ;;  %v2713_v62 = vadd.f32 %v2705_v60, %v3759_v63 }
 0x5f1   :  { %v2723_v6 = vsel %vm94_vm0, %v2713_v62, 0.0  ;;  %v2714_v48 = vadd.f32 %v2708_v52, %v3750_v59 }
 0x5f2   :  { %2724 = vadd.xlane.f32.xlu0 %v2723_v6 }
 0x5f3   :  { %v2726_v50 = vsel %vm94_vm0, %v2714_v48, 0.0 }
 0x5f4   :  { %2727 = vadd.xlane.f32.xlu1 %v2726_v50 }
 0x677   :  { %v2719_v0 = vpop.xlane.xlu0 %2718 }
 0x678   :  { %v2729_v1 = vmul.f32 0.03125, %v2719_v0 }
 0x679   :  { %v2722_v3 = vpop.xlane.xlu1 %2721 }
 0x67a   :  { %v2733_v5 = vsub.f32 %v2711_v10, %v2729_v1  ;;  %v2730_v27 = vmul.f32 0.03125, %v2722_v3 }
 0x67c   :  { %v2734_v29 = vsub.f32 %v2712_v2, %v2730_v27  ;;  %v2737_v30 = vmul.f32 %v2733_v5, %v2733_v5 }
 0x67e   :  { %v2741_v31 = vsel %vm94_vm0, %v2737_v30, 0.0  ;;  %v2738_v23 = vmul.f32 %v2734_v29, %v2734_v29 }
 0x67f   :  { %2742 = vadd.xlane.f32.xlu0 %v2741_v31  ;;  %v2725_v63 = vpop.xlane.xlu0 %2724 }
 0x680   :  { %v2731_v12 = vmul.f32 0.03125, %v2725_v63  ;;  %v2744_v26 = vsel %vm94_vm0, %v2738_v23, 0.0 }
 0x681   :  { %2745 = vadd.xlane.f32.xlu1 %v2744_v26  ;;  %v2728_v59 = vpop.xlane.xlu1 %2727 }
 0x682   :  { %v2735_v38 = vsub.f32 %v2713_v62, %v2731_v12  ;;  %v2732_v16 = vmul.f32 0.03125, %v2728_v59 }
 0x684   :  { %v2736_v24 = vsub.f32 %v2714_v48, %v2732_v16  ;;  %v2739_v49 = vmul.f32 %v2735_v38, %v2735_v38 }
 0x686   :  { %v2747_v21 = vsel %vm94_vm0, %v2739_v49, 0.0  ;;  %v2740_v32 = vmul.f32 %v2736_v24, %v2736_v24 }
 0x687   :  { %2748 = vadd.xlane.f32.xlu0 %v2747_v21 }
 0x688   :  { %v2750_v4 = vsel %vm94_vm0, %v2740_v32, 0.0 }
 0x689   :  { %2751 = vadd.xlane.f32.xlu1 %v2750_v4 }
 0x70c   :  { %v2743_v51 = vpop.xlane.xlu0 %2742 }
 0x70d   :  { %v2753_v15 = vmul.f32 0.03125, %v2743_v51 }
 0x70e   :  { %v2746_v46 = vpop.xlane.xlu1 %2745 }
 0x70f   :  { %v2757_v47 = vadd.f32 1e-05, %v2753_v15  ;;  %v2754_v57 = vmul.f32 0.03125, %v2746_v46 }
 0x711   :  { %v2758_v25 = vadd.f32 1e-05, %v2754_v57  ;;  %3453 = vrsqrt.f32 %v2757_v47 }
 0x713   :  { %3455 = vrsqrt.f32 %v2758_v25 }
 0x714   :  { %v2749_v22 = vpop.xlane.xlu0 %2748 }
 0x715   :  { %v2755_v35 = vmul.f32 0.03125, %v2749_v22 }
 0x716   :  { %v2752_v44 = vpop.xlane.xlu1 %2751 }
 0x717   :  { %v2759_v37 = vadd.f32 1e-05, %v2755_v35  ;;  %v2756_v14 = vmul.f32 0.03125, %v2752_v44 }
 0x719   :  { %3457 = vrsqrt.f32 %v2759_v37  ;;  %v2760_v9 = vadd.f32 1e-05, %v2756_v14 }
 0x71b   :  { %3459 = vrsqrt.f32 %v2760_v9  ;;  %v3454_v61 = vpop.eup %3453 }
 0x71c   :  { %v2765_v45 = vmul.f32 %v3454_v61, %v2733_v5 }
 0x71d   :  { %v3456_v34 = vpop.eup %3455 }
 0x71e   :  { %v2766_v40 = vmul.f32 %v3456_v34, %v2734_v29  ;;  %v2773_v43 = vmul.f32 %v3005_v39, %v2765_v45 }
 0x720   :  { %v2774_v7 = vmul.f32 %v3005_v39, %v2766_v40  ;;  %v2781_v11 = vadd.f32 %v3006_v41, %v2773_v43 }
 0x722   :  { %v2782_v10 = vadd.f32 %v3006_v41, %v2774_v7 }
 0x723   :  { %v3458_v42 = vpop.eup %3457 }
 0x724   :  { %v2767_v8 = vmul.f32 %v3458_v42, %v2735_v38 }
 0x725   :  { %v3460_v33 = vpop.eup %3459 }
 0x726   :  { %v2775_v13 = vmul.f32 %v3005_v39, %v2767_v8  ;;  %v2768_v18 = vmul.f32 %v3460_v33, %v2736_v24 }
 0x728   :  { %v2776_v20 = vmul.f32 %v3005_v39, %v2768_v18  ;;  %v2783_v53 = vadd.f32 %v3006_v41, %v2775_v13 }
 0x72a   :  { %v2784_v55 = vadd.f32 %v3006_v41, %v2776_v20  ;;  %v2785_v54 = vadd.f32 %v2783_v53, %v2781_v11 }
 0x72c   :  { %v2786_v2 = vadd.f32 %v2784_v55, %v2782_v10  ;;  %v2787_v56 = vmul.f32 0.5, %v2785_v54 }
 0x72e   :  { %v2788_v17 = vmul.f32 0.5, %v2786_v2  ;;  %2789 = vst.msk [vmem:[#allocation2] sm:$0xff] %vm94_vm0, %v2787_v56 }
 0x730   :  { %2790 = vst.msk [vmem:[#allocation2 + $0x8] sm:$0xff] %vm94_vm0, %v2788_v17 }
 0x731   :  { %3472 = shalt.err (!%p3469_p4)
}
 0x732   :  { %s3473_s2 = scalar_lea.hbm %s4454_s8, 256 }
 0x733   :  { %p3474_p5 = scmp.ne.s32.totalorder %s4454_s8, %s3473_s2  ;;  %p3477_p6 = scmp.lt.u32.totalorder %s3473_s2, %s4454_s8 }
 0x735   :  { %p3479_p7 = pnand %p3477_p6, %p3474_p5 }
 0x737   :  { %3482 = shalt.err (!%p3479_p7)
}
 0x738   :  { %s3487_s28 = smov 128   ;;  %s3488_s29 = smov 8  }
 0x739   :  { %2802 = dma.vmem_to_hbm [thread:$0]  %s2797_s0, 256, %s4454_s8, [#allocation3], %s3487_s28, %s3487_s28, %s3488_s29  }
 0x73a   :  { %3483 = dma.done.wait [#allocation3], 256  }
 0x73b   :  { %3484 = vsyncadd [#allocation3], 4294967040 }
 0x73c   :  { %2806 = vsyncpa [#allocation3], 1 }

</bundles_post_ra>
